<compile_context>
chip_gen: v6e
topology: v6e:2x2x1
jax: 0.10.0
libtpu: 0.0.40
codegen_flags: <defaults>
</compile_context>

<pallas_src>
import math

import jax
import jax.numpy as jnp
import numpy as np
from jax.experimental import pallas as pl
from jax.experimental.pallas import tpu as pltpu


# ----------------------------------------------------------- fused kernel ---
def _build_decoder_kernel(St, Ss, H, num_heads, has_tgt_mask, has_src_mask):
    nh = num_heads
    Dh = H // nh

    def split_heads(x2d):
        # [S, H] -> [nh, S, Dh]  purely value-level: static lane slices stacked
        # along a new leading (batch) axis.  No scratch, no masked stores.
        return jnp.stack([x2d[:, h * Dh:(h + 1) * Dh] for h in range(nh)], axis=0)

    def merge_heads(o3):
        # [nh, S, Dh] -> [S, H] via a single lane-dim concatenate.
        return jnp.concatenate([o3[h] for h in range(nh)], axis=-1)

    def mm(x, w_ref, b_ref):
        # bf16 operands on the MXU, f32 accumulation, f32 bias add.
        return (jnp.dot(x.astype(jnp.bfloat16), w_ref[...],
                        preferred_element_type=jnp.float32) + b_ref[...])

    def attention(q3, k3, v3, add_mask_ref):
        # q3 [nh, Sq, Dh], k3/v3 [nh, Sk, Dh]; 1/sqrt(Dh) already folded into Wq.
        s = jnp.einsum("hqd,hkd->hqk",
                       q3.astype(jnp.bfloat16), k3.astype(jnp.bfloat16),
                       preferred_element_type=jnp.float32)       # [nh, Sq, Sk]
        if add_mask_ref is not None:
            s = s + add_mask_ref[...][None, :, :]                # additive 0/-1e9
        mx = jnp.max(s, axis=-1, keepdims=True)
        p = jnp.exp(s - mx)
        denom = jnp.sum(p, axis=-1, keepdims=True)
        p = p * pl.reciprocal(denom, approx=True)                # EUP slot
        o3 = jnp.einsum("hqk,hkd->hqd",
                        p.astype(jnp.bfloat16), v3.astype(jnp.bfloat16),
                        preferred_element_type=jnp.float32)      # [nh, Sq, Dh]
        return merge_heads(o3)                                   # [Sq, H]

    def kernel(*refs):
        it = iter(refs)
        x_ref = next(it)                    # [1, St, H]  bf16
        mem_ref = next(it)                  # [1, Ss, H]  bf16
        tgt_mask_ref = next(it) if has_tgt_mask else None        # [St, St] f32
        src_mask_ref = next(it) if has_src_mask else None        # [St, Ss] f32
        wqkv_s = next(it); bqkv_s = next(it)      # [H, 3H] / [1, 3H]
        w_oq = next(it); b_oq = next(it)          # Wo_self @ Wq_enc (folded)
        wkv_e = next(it); bkv_e = next(it)        # [H, 2H] / [1, 2H]
        w_o1 = next(it); b_o1 = next(it)          # Wo_enc @ W1 (folded)
        w2 = next(it); b2 = next(it)              # [4H, H] / [1, H]
        out_ref = next(it)                  # [1, St, H]  f32

        x = x_ref[0]                        # [St, H]
        mem = mem_ref[0]                    # [Ss, H]

        # ---- self attention (fused QKV projection) --------------------------
        qkv = mm(x, wqkv_s, bqkv_s)                              # [St, 3H]
        attn1 = attention(split_heads(qkv[:, 0:H]),
                          split_heads(qkv[:, H:2 * H]),
                          split_heads(qkv[:, 2 * H:3 * H]),
                          tgt_mask_ref)                          # [St, H]

        # ---- cross attention (self-attn output proj folded into Wq_enc) -----
        q_enc = mm(attn1, w_oq, b_oq)                            # [St, H]
        kv = mm(mem, wkv_e, bkv_e)                               # [Ss, 2H]
        attn2 = attention(split_heads(q_enc),
                          split_heads(kv[:, 0:H]),
                          split_heads(kv[:, H:2 * H]),
                          src_mask_ref)                          # [St, H]

        # ---- feed-forward (cross-attn output proj folded into W1) -----------
        h1 = mm(attn2, w_o1, b_o1)                               # [St, 4H]
        y = mm(h1, w2, b2)                                       # [St, H]
        out_ref[0] = y.astype(out_ref.dtype)

    return kernel


# ------------------------------------------------ one-time parameter prep ---
def prepare_decoder_params(params, num_heads):
    """Load-time weight prep: fuse QKV/KV projections, fold 1/sqrt(Dh) into the
    Q projections, fold Wo_self into Wq_enc and Wo_enc into W1 (exact here:
    no residual/LN between those ops).  All composition in f32; bf16 cast last."""
    H = params["w1"].shape[0]
    Dh = H // num_heads
    scale = 1.0 / math.sqrt(Dh)
    sa, ea = params["self_attn"], params["enc_attn"]

    f32 = lambda a: a.astype(jnp.float32)
    bf = lambda w: w.astype(jnp.bfloat16)
    row = lambda b: b.reshape(1, -1).astype(jnp.float32)

    wq_e_s = f32(ea["wq"]) * scale
    bq_e_s = f32(ea["bq"]) * scale

    wqkv_self = jnp.concatenate([f32(sa["wq"]) * scale, f32(sa["wk"]), f32(sa["wv"])], axis=1)
    bqkv_self = jnp.concatenate([f32(sa["bq"]) * scale, f32(sa["bk"]), f32(sa["bv"])])

    # Fold self-attn output projection into the cross-attn Q projection (f32).
    w_oq = f32(sa["wo"]) @ wq_e_s
    b_oq = f32(sa["bo"]) @ wq_e_s + bq_e_s

    wkv_enc = jnp.concatenate([f32(ea["wk"]), f32(ea["wv"])], axis=1)
    bkv_enc = jnp.concatenate([f32(ea["bk"]), f32(ea["bv"])])

    # Fold cross-attn output projection into linear1 (f32).
    w_o1 = f32(ea["wo"]) @ f32(params["w1"])
    b_o1 = f32(ea["bo"]) @ f32(params["w1"]) + f32(params["b1"])

    return dict(
        wqkv_self=bf(wqkv_self), bqkv_self=row(bqkv_self),
        w_oq=bf(w_oq), b_oq=row(b_oq),
        wkv_enc=bf(wkv_enc), bkv_enc=row(bkv_enc),
        w_o1=bf(w_o1), b_o1=row(b_o1),
        w2=bf(params["w2"]), b2=row(params["b2"]),
    )


# --------------------------------------------------- VMEM footprint (padded) -
def _padded_vmem_bytes(shape, dtype):
    """Tile-padded VMEM bytes: last dim -> multiple of 128 lanes, second-to-last
    -> multiple of 8 (f32) / 16 (bf16) sublanes."""
    itemsize = jnp.dtype(dtype).itemsize
    sublane_mult = 8 * (4 // itemsize)          # f32: 8, bf16: 16
    dims = list(shape)
    if len(dims) < 2:
        dims = [1] * (2 - len(dims)) + dims
    lanes = -(-dims[-1] // 128) * 128
    subl = -(-dims[-2] // sublane_mult) * sublane_mult
    lead = 1
    for d in dims[:-2]:
        lead *= d
    return lead * subl * lanes * itemsize


# ---------------------------------------------------------- decoder layer ---
def decoder_layer(fused, x, memory, src_mask=None, tgt_mask=None, num_heads=4):
    B, St, H = x.shape
    Ss = memory.shape[1]
    nh = num_heads
    Dh = H // nh
    assert H % nh == 0

    kernel = _build_decoder_kernel(St, Ss, H, nh,
                                   tgt_mask is not None, src_mask is not None)

    def additive(m):   # nonzero = attend  ->  0 ; zero = masked -> -1e9
        return jnp.where(m != 0, 0.0, -1e9).astype(jnp.float32)

    inputs = [x.astype(jnp.bfloat16), memory.astype(jnp.bfloat16)]
    in_specs = [pl.BlockSpec((1, St, H), lambda b: (b, 0, 0)),
                pl.BlockSpec((1, Ss, H), lambda b: (b, 0, 0))]
    if tgt_mask is not None:
        inputs.append(additive(tgt_mask))
        in_specs.append(pl.BlockSpec((St, St), lambda b: (0, 0)))
    if src_mask is not None:
        inputs.append(additive(src_mask))
        in_specs.append(pl.BlockSpec((St, Ss), lambda b: (0, 0)))

    weight_names = ["wqkv_self", "bqkv_self", "w_oq", "b_oq",
                    "wkv_enc", "bkv_enc", "w_o1", "b_o1", "w2", "b2"]
    for name in weight_names:
        w = fused[name]
        inputs.append(w)
        # Same block index every grid step -> weights stay VMEM-resident.
        in_specs.append(pl.BlockSpec(tuple(w.shape), lambda b: (0, 0)))

    out_spec = pl.BlockSpec((1, St, H), lambda b: (b, 0, 0))
    out_shape = jax.ShapeDtypeStruct((B, St, H), jnp.float32)

    # ---- tile-padded VMEM budget (v7x-safe) ---------------------------------
    weights_bytes = sum(_padded_vmem_bytes(fused[n].shape, fused[n].dtype)
                        for n in weight_names)
    mask_bytes = 0
    if tgt_mask is not None:
        mask_bytes += _padded_vmem_bytes((St, St), jnp.float32)
    if src_mask is not None:
        mask_bytes += _padded_vmem_bytes((St, Ss), jnp.float32)
    act_block_bytes = (_padded_vmem_bytes((1, St, H), jnp.bfloat16)
                       + _padded_vmem_bytes((1, Ss, H), jnp.bfloat16)
                       + _padded_vmem_bytes((1, St, H), jnp.float32))
    interm_bytes = (_padded_vmem_bytes((St, 3 * H), jnp.float32)
                    + _padded_vmem_bytes((Ss, 2 * H), jnp.float32)
                    + _padded_vmem_bytes((St, 4 * H), jnp.float32)
                    + 6 * _padded_vmem_bytes((nh, max(St, Ss), Dh), jnp.float32)
                    + 2 * _padded_vmem_bytes((nh, St, max(St, Ss)), jnp.float32))
    vmem_need = weights_bytes + mask_bytes + 2 * act_block_bytes + 2 * interm_bytes
    assert vmem_need < 40 * 1024 * 1024, \
        "use a tiled/pipelined GEMM path for large shapes (see TODO at top)"
    vmem_limit = int(min(48 * 1024 * 1024, max(2 * vmem_need, 16 * 1024 * 1024)))

    # ---- advisory cost estimate ---------------------------------------------
    Mq, Mk = B * St, B * Ss
    flops = 2 * (Mq * H * 3 * H                  # fused self QKV
                 + 2 * B * nh * St * St * Dh     # self-attn QK^T + PV
                 + Mq * H * H                    # folded Wo_self@Wq_enc
                 + Mk * H * 2 * H                # fused enc KV
                 + 2 * B * nh * St * Ss * Dh     # cross-attn QK^T + PV
                 + Mq * H * 4 * H                # folded Wo_enc@W1
                 + Mq * 4 * H * H)               # linear2
    transcendentals = B * nh * (St * St + St * Ss)
    bytes_accessed = int(sum(int(np.prod(a.shape)) * a.dtype.itemsize for a in inputs)
                         + B * St * H * 4)

    out = pl.pallas_call(
        kernel,
        out_shape=out_shape,
        grid=(B,),
        in_specs=in_specs,
        out_specs=out_spec,
        compiler_params=pltpu.CompilerParams(
            dimension_semantics=("parallel",),     # v7x: one batch per TC
            vmem_limit_bytes=vmem_limit),
        cost_estimate=pl.CostEstimate(flops=int(flops),
                                      transcendentals=int(transcendentals),
                                      bytes_accessed=bytes_accessed),
    )(*inputs)
    return out


# ------------------------------------------------------ pure-JAX reference --
def _ref_linear(x2d, w, b):
    return x2d @ w + b


def _ref_mha(p, q_in, k_in, v_in, mask, num_heads):
    B, Sq, H = q_in.shape
    Sk = k_in.shape[1]
    Dh = H // num_heads
    q = _ref_linear(q_in.reshape(B * Sq, H), p["wq"], p["bq"]).reshape(B, Sq, num_heads, Dh)
    k = _ref_linear(k_in.reshape(B * Sk, H), p["wk"], p["bk"]).reshape(B, Sk, num_heads, Dh)
    v = _ref_linear(v_in.reshape(B * Sk, H), p["wv"], p["bv"]).reshape(B, Sk, num_heads, Dh)
    q = q.transpose(0, 2, 1, 3)
    k = k.transpose(0, 2, 1, 3)
    v = v.transpose(0, 2, 1, 3)
    s = jnp.einsum("bhqd,bhkd->bhqk", q, k) / math.sqrt(Dh)
    if mask is None:
        mask = jnp.ones((Sq, Sk), jnp.float32)
    s = jnp.where(mask[None, None] != 0.0, s, -1e9)
    p_attn = jax.nn.softmax(s, axis=-1)
    o = jnp.einsum("bhqk,bhkd->bhqd", p_attn, v)
    o = o.transpose(0, 2, 1, 3).reshape(B * Sq, H)
    return _ref_linear(o, p["wo"], p["bo"]).reshape(B, Sq, H)


def _ref_decoder(params, x, memory, src_mask, tgt_mask, num_heads):
    x = _ref_mha(params["self_attn"], x, x, x, tgt_mask, num_heads)
    x = _ref_mha(params["enc_attn"], x, memory, memory, src_mask, num_heads)
    B, S, H = x.shape
    h = _ref_linear(x.reshape(B * S, H), params["w1"], params["b1"])
    y = _ref_linear(h, params["w2"], params["b2"])
    return y.reshape(B, S, H)


# ----------------------------------------------------------------- params ---
def init_params(key, hidden_size):
    def lin(k, fan_in, fan_out):
        kw, kb = jax.random.split(k)
        scale = 1.0 / math.sqrt(fan_in)
        w = jax.random.uniform(kw, (fan_in, fan_out), jnp.float32, -scale, scale)
        b = jax.random.uniform(kb, (fan_out,), jnp.float32, -scale, scale)
        return w, b

    def mha_params(k):
        ks = jax.random.split(k, 4)
        wq, bq = lin(ks[0], hidden_size, hidden_size)
        wk, bk = lin(ks[1], hidden_size, hidden_size)
        wv, bv = lin(ks[2], hidden_size, hidden_size)
        wo, bo = lin(ks[3], hidden_size, hidden_size)
        return dict(wq=wq, bq=bq, wk=wk, bk=bk, wv=wv, bv=bv, wo=wo, bo=bo)

    k0, k1, k2, k3 = jax.random.split(key, 4)
    w1, b1 = lin(k2, hidden_size, 4 * hidden_size)
    w2, b2 = lin(k3, 4 * hidden_size, hidden_size)
    return dict(self_attn=mha_params(k0), enc_attn=mha_params(k1),
                w1=w1, b1=b1, w2=w2, b2=b2)


# ------------------------------------------------------------------- main ---
if __name__ == "__main__":
    hidden_size = 32
    num_heads = 4
    B, S_tgt, S_src = 2, 8, 8

    key = jax.random.PRNGKey(0)
    kp, kx, km = jax.random.split(key, 3)

    params = init_params(kp, hidden_size)
    x = jax.random.normal(kx, (B, S_tgt, hidden_size), jnp.float32)
    memory = jax.random.normal(km, (B, S_src, hidden_size), jnp.float32)

    # causal target mask, no source mask (typical decoder usage)
    tgt_mask = jnp.tril(jnp.ones((S_tgt, S_tgt), jnp.float32))
    src_mask = None

    fused = prepare_decoder_params(params, num_heads)
    out = decoder_layer(fused, x, memory, src_mask=src_mask, tgt_mask=tgt_mask,
                        num_heads=num_heads)
    out = jax.block_until_ready(out)

    ref = _ref_decoder(params, x, memory, src_mask, tgt_mask, num_heads)
    # bf16 MXU operands + approx reciprocal -> ~1e-2-level error vs f32 ref.
    np.testing.assert_allclose(np.asarray(out), np.asarray(ref),
                               rtol=2e-2, atol=2e-2)

    print("KERNEL_OK")
</pallas_src>

<mosaic_0001>
module attributes {stable_mosaic.version = 11 : i64} {
  func.func @kernel(%arg0: i32, %arg1: memref<1x8x32xbf16, #tpu.memory_space<vmem>>, %arg2: memref<1x8x32xbf16, #tpu.memory_space<vmem>>, %arg3: memref<8x8xf32, #tpu.memory_space<vmem>>, %arg4: memref<32x96xbf16, #tpu.memory_space<vmem>>, %arg5: memref<1x96xf32, #tpu.memory_space<vmem>>, %arg6: memref<32x32xbf16, #tpu.memory_space<vmem>>, %arg7: memref<1x32xf32, #tpu.memory_space<vmem>>, %arg8: memref<32x64xbf16, #tpu.memory_space<vmem>>, %arg9: memref<1x64xf32, #tpu.memory_space<vmem>>, %arg10: memref<32x128xbf16, #tpu.memory_space<vmem>>, %arg11: memref<1x128xf32, #tpu.memory_space<vmem>>, %arg12: memref<128x32xbf16, #tpu.memory_space<vmem>>, %arg13: memref<1x32xf32, #tpu.memory_space<vmem>>, %arg14: memref<1x8x32xf32, #tpu.memory_space<vmem>>) attributes {dimension_semantics = [#tpu.dimension_semantics<parallel>], iteration_bounds = array<i64: 2>, scalar_prefetch = 0 : i64, scratch_operands = 0 : i64, tpu.core_type = #tpu.core_type<tc>, window_params = [{transform_indices = @transform_0, window_bounds = array<i64: 1, 8, 32>}, {transform_indices = @transform_1, window_bounds = array<i64: 1, 8, 32>}, {pipeline_mode = #tpu.pipeline_mode<synchronous>, transform_indices = @transform_2, window_bounds = array<i64: 8, 8>}, {pipeline_mode = #tpu.pipeline_mode<synchronous>, transform_indices = @transform_3, window_bounds = array<i64: 32, 96>}, {pipeline_mode = #tpu.pipeline_mode<synchronous>, transform_indices = @transform_4, window_bounds = array<i64: 1, 96>}, {pipeline_mode = #tpu.pipeline_mode<synchronous>, transform_indices = @transform_5, window_bounds = array<i64: 32, 32>}, {pipeline_mode = #tpu.pipeline_mode<synchronous>, transform_indices = @transform_6, window_bounds = array<i64: 1, 32>}, {pipeline_mode = #tpu.pipeline_mode<synchronous>, transform_indices = @transform_7, window_bounds = array<i64: 32, 64>}, {pipeline_mode = #tpu.pipeline_mode<synchronous>, transform_indices = @transform_8, window_bounds = array<i64: 1, 64>}, {pipeline_mode = #tpu.pipeline_mode<synchronous>, transform_indices = @transform_9, window_bounds = array<i64: 32, 128>}, {pipeline_mode = #tpu.pipeline_mode<synchronous>, transform_indices = @transform_10, window_bounds = array<i64: 1, 128>}, {pipeline_mode = #tpu.pipeline_mode<synchronous>, transform_indices = @transform_11, window_bounds = array<i64: 128, 32>}, {pipeline_mode = #tpu.pipeline_mode<synchronous>, transform_indices = @transform_12, window_bounds = array<i64: 1, 32>}, {transform_indices = @transform_13, window_bounds = array<i64: 1, 8, 32>}]} {
    %c0 = arith.constant 0 : index
    %c0_0 = arith.constant 0 : index
    %c0_1 = arith.constant 0 : index
    %0 = vector.load %arg1[%c0, %c0_0, %c0_1] : memref<1x8x32xbf16, #tpu.memory_space<vmem>>, vector<1x8x32xbf16>
    %1 = vector.shape_cast %0 : vector<1x8x32xbf16> to vector<8x32xbf16>
    %c0_2 = arith.constant 0 : index
    %c0_3 = arith.constant 0 : index
    %c0_4 = arith.constant 0 : index
    %2 = vector.load %arg2[%c0_2, %c0_3, %c0_4] : memref<1x8x32xbf16, #tpu.memory_space<vmem>>, vector<1x8x32xbf16>
    %3 = vector.shape_cast %2 : vector<1x8x32xbf16> to vector<8x32xbf16>
    %c0_5 = arith.constant 0 : index
    %c0_6 = arith.constant 0 : index
    %4 = vector.load %arg4[%c0_5, %c0_6] : memref<32x96xbf16, #tpu.memory_space<vmem>>, vector<32x96xbf16>
    %cst = arith.constant dense<0.000000e+00> : vector<8x96xf32>
    %5 = tpu.matmul %1, %4, %cst {dimension_numbers = #tpu.dot_dimension_numbers<[1], [0], [0], [1], [0, 0, 1, 1], [], []>} : vector<8x32xbf16>, vector<32x96xbf16>, vector<8x96xf32> -> vector<8x96xf32>
    %c0_7 = arith.constant 0 : index
    %c0_8 = arith.constant 0 : index
    %6 = vector.load %arg5[%c0_7, %c0_8] : memref<1x96xf32, #tpu.memory_space<vmem>>, vector<1x96xf32>
    %7 = vector.broadcast %6 : vector<1x96xf32> to vector<8x96xf32>
    %8 = arith.addf %5, %7 : vector<8x96xf32>
    %9 = vector.extract_strided_slice %8 {offsets = [0, 0], sizes = [8, 32], strides = [1, 1]} : vector<8x96xf32> to vector<8x32xf32>
    %10 = vector.extract_strided_slice %9 {offsets = [0, 0], sizes = [8, 8], strides = [1, 1]} : vector<8x32xf32> to vector<8x8xf32>
    %11 = vector.extract_strided_slice %9 {offsets = [0, 8], sizes = [8, 8], strides = [1, 1]} : vector<8x32xf32> to vector<8x8xf32>
    %12 = vector.extract_strided_slice %9 {offsets = [0, 16], sizes = [8, 8], strides = [1, 1]} : vector<8x32xf32> to vector<8x8xf32>
    %13 = vector.extract_strided_slice %9 {offsets = [0, 24], sizes = [8, 8], strides = [1, 1]} : vector<8x32xf32> to vector<8x8xf32>
    %14 = vector.shape_cast %10 : vector<8x8xf32> to vector<1x8x8xf32>
    %15 = vector.shape_cast %11 : vector<8x8xf32> to vector<1x8x8xf32>
    %16 = vector.shape_cast %12 : vector<8x8xf32> to vector<1x8x8xf32>
    %17 = vector.shape_cast %13 : vector<8x8xf32> to vector<1x8x8xf32>
    %18 = tpu.concatenate %14, %15, %16, %17 in 0 : vector<1x8x8xf32>, vector<1x8x8xf32>, vector<1x8x8xf32>, vector<1x8x8xf32> -> vector<4x8x8xf32>
    %19 = vector.extract_strided_slice %8 {offsets = [0, 32], sizes = [8, 32], strides = [1, 1]} : vector<8x96xf32> to vector<8x32xf32>
    %20 = vector.extract_strided_slice %19 {offsets = [0, 0], sizes = [8, 8], strides = [1, 1]} : vector<8x32xf32> to vector<8x8xf32>
    %21 = vector.extract_strided_slice %19 {offsets = [0, 8], sizes = [8, 8], strides = [1, 1]} : vector<8x32xf32> to vector<8x8xf32>
    %22 = vector.extract_strided_slice %19 {offsets = [0, 16], sizes = [8, 8], strides = [1, 1]} : vector<8x32xf32> to vector<8x8xf32>
    %23 = vector.extract_strided_slice %19 {offsets = [0, 24], sizes = [8, 8], strides = [1, 1]} : vector<8x32xf32> to vector<8x8xf32>
    %24 = vector.shape_cast %20 : vector<8x8xf32> to vector<1x8x8xf32>
    %25 = vector.shape_cast %21 : vector<8x8xf32> to vector<1x8x8xf32>
    %26 = vector.shape_cast %22 : vector<8x8xf32> to vector<1x8x8xf32>
    %27 = vector.shape_cast %23 : vector<8x8xf32> to vector<1x8x8xf32>
    %28 = tpu.concatenate %24, %25, %26, %27 in 0 : vector<1x8x8xf32>, vector<1x8x8xf32>, vector<1x8x8xf32>, vector<1x8x8xf32> -> vector<4x8x8xf32>
    %29 = vector.extract_strided_slice %8 {offsets = [0, 64], sizes = [8, 32], strides = [1, 1]} : vector<8x96xf32> to vector<8x32xf32>
    %30 = vector.extract_strided_slice %29 {offsets = [0, 0], sizes = [8, 8], strides = [1, 1]} : vector<8x32xf32> to vector<8x8xf32>
    %31 = vector.extract_strided_slice %29 {offsets = [0, 8], sizes = [8, 8], strides = [1, 1]} : vector<8x32xf32> to vector<8x8xf32>
    %32 = vector.extract_strided_slice %29 {offsets = [0, 16], sizes = [8, 8], strides = [1, 1]} : vector<8x32xf32> to vector<8x8xf32>
    %33 = vector.extract_strided_slice %29 {offsets = [0, 24], sizes = [8, 8], strides = [1, 1]} : vector<8x32xf32> to vector<8x8xf32>
    %34 = vector.shape_cast %30 : vector<8x8xf32> to vector<1x8x8xf32>
    %35 = vector.shape_cast %31 : vector<8x8xf32> to vector<1x8x8xf32>
    %36 = vector.shape_cast %32 : vector<8x8xf32> to vector<1x8x8xf32>
    %37 = vector.shape_cast %33 : vector<8x8xf32> to vector<1x8x8xf32>
    %38 = tpu.concatenate %34, %35, %36, %37 in 0 : vector<1x8x8xf32>, vector<1x8x8xf32>, vector<1x8x8xf32>, vector<1x8x8xf32> -> vector<4x8x8xf32>
    %39 = arith.truncf %18 : vector<4x8x8xf32> to vector<4x8x8xbf16>
    %40 = arith.truncf %28 : vector<4x8x8xf32> to vector<4x8x8xbf16>
    "tpu.trace_start"() <{level = 10 : i32, message = "hqd,hkd->hqk"}> : () -> ()
    %cst_9 = arith.constant dense<0.000000e+00> : vector<4x8x8xf32>
    %41 = tpu.matmul %39, %40, %cst_9 {dimension_numbers = #tpu.dot_dimension_numbers<[2], [2], [1], [1], [0, 0, 0, 1, 1, 1], [0], [0]>} : vector<4x8x8xbf16>, vector<4x8x8xbf16>, vector<4x8x8xf32> -> vector<4x8x8xf32>
    "tpu.trace_stop"() : () -> ()
    %c0_10 = arith.constant 0 : index
    %c0_11 = arith.constant 0 : index
    %42 = vector.load %arg3[%c0_10, %c0_11] : memref<8x8xf32, #tpu.memory_space<vmem>>, vector<8x8xf32>
    %43 = vector.shape_cast %42 : vector<8x8xf32> to vector<1x8x8xf32>
    %44 = vector.broadcast %43 : vector<1x8x8xf32> to vector<4x8x8xf32>
    %45 = arith.addf %41, %44 : vector<4x8x8xf32>
    %cst_12 = arith.constant dense<0xFF800000> : vector<4x8xf32>
    %46 = vector.multi_reduction <maximumf>, %45, %cst_12 [2] : vector<4x8x8xf32> to vector<4x8xf32>
    %47 = vector.shape_cast %46 : vector<4x8xf32> to vector<4x8x1xf32>
    %48 = vector.broadcast %47 : vector<4x8x1xf32> to vector<4x8x8xf32>
    %49 = arith.subf %45, %48 : vector<4x8x8xf32>
    %50 = math.exp %49 : vector<4x8x8xf32>
    %cst_13 = arith.constant dense<0.000000e+00> : vector<4x8xf32>
    %51 = vector.multi_reduction <add>, %50, %cst_13 [2] : vector<4x8x8xf32> to vector<4x8xf32>
    %52 = vector.shape_cast %51 : vector<4x8xf32> to vector<4x8x1xf32>
    %53 = tpu.reciprocal %52 {approx = true} : vector<4x8x1xf32> -> vector<4x8x1xf32>
    %54 = vector.broadcast %53 : vector<4x8x1xf32> to vector<4x8x8xf32>
    %55 = arith.mulf %50, %54 : vector<4x8x8xf32>
    %56 = arith.truncf %55 : vector<4x8x8xf32> to vector<4x8x8xbf16>
    %57 = arith.truncf %38 : vector<4x8x8xf32> to vector<4x8x8xbf16>
    "tpu.trace_start"() <{level = 10 : i32, message = "hqk,hkd->hqd"}> : () -> ()
    %cst_14 = arith.constant dense<0.000000e+00> : vector<4x8x8xf32>
    %58 = tpu.matmul %56, %57, %cst_14 {dimension_numbers = #tpu.dot_dimension_numbers<[2], [1], [1], [2], [0, 0, 0, 1, 1, 2], [0], [0]>} : vector<4x8x8xbf16>, vector<4x8x8xbf16>, vector<4x8x8xf32> -> vector<4x8x8xf32>
    "tpu.trace_stop"() : () -> ()
    %59 = vector.extract_strided_slice %58 {offsets = [0, 0, 0], sizes = [1, 8, 8], strides = [1, 1, 1]} : vector<4x8x8xf32> to vector<1x8x8xf32>
    %60 = vector.shape_cast %59 : vector<1x8x8xf32> to vector<8x8xf32>
    %61 = vector.extract_strided_slice %58 {offsets = [1, 0, 0], sizes = [1, 8, 8], strides = [1, 1, 1]} : vector<4x8x8xf32> to vector<1x8x8xf32>
    %62 = vector.shape_cast %61 : vector<1x8x8xf32> to vector<8x8xf32>
    %63 = vector.extract_strided_slice %58 {offsets = [2, 0, 0], sizes = [1, 8, 8], strides = [1, 1, 1]} : vector<4x8x8xf32> to vector<1x8x8xf32>
    %64 = vector.shape_cast %63 : vector<1x8x8xf32> to vector<8x8xf32>
    %65 = vector.extract_strided_slice %58 {offsets = [3, 0, 0], sizes = [1, 8, 8], strides = [1, 1, 1]} : vector<4x8x8xf32> to vector<1x8x8xf32>
    %66 = vector.shape_cast %65 : vector<1x8x8xf32> to vector<8x8xf32>
    %67 = tpu.concatenate %60, %62, %64, %66 in 1 : vector<8x8xf32>, vector<8x8xf32>, vector<8x8xf32>, vector<8x8xf32> -> vector<8x32xf32>
    %68 = arith.truncf %67 : vector<8x32xf32> to vector<8x32xbf16>
    %c0_15 = arith.constant 0 : index
    %c0_16 = arith.constant 0 : index
    %69 = vector.load %arg6[%c0_15, %c0_16] : memref<32x32xbf16, #tpu.memory_space<vmem>>, vector<32x32xbf16>
    %cst_17 = arith.constant dense<0.000000e+00> : vector<8x32xf32>
    %70 = tpu.matmul %68, %69, %cst_17 {dimension_numbers = #tpu.dot_dimension_numbers<[1], [0], [0], [1], [0, 0, 1, 1], [], []>} : vector<8x32xbf16>, vector<32x32xbf16>, vector<8x32xf32> -> vector<8x32xf32>
    %c0_18 = arith.constant 0 : index
    %c0_19 = arith.constant 0 : index
    %71 = vector.load %arg7[%c0_18, %c0_19] : memref<1x32xf32, #tpu.memory_space<vmem>>, vector<1x32xf32>
    %72 = vector.broadcast %71 : vector<1x32xf32> to vector<8x32xf32>
    %73 = arith.addf %70, %72 : vector<8x32xf32>
    %c0_20 = arith.constant 0 : index
    %c0_21 = arith.constant 0 : index
    %74 = vector.load %arg8[%c0_20, %c0_21] : memref<32x64xbf16, #tpu.memory_space<vmem>>, vector<32x64xbf16>
    %cst_22 = arith.constant dense<0.000000e+00> : vector<8x64xf32>
    %75 = tpu.matmul %3, %74, %cst_22 {dimension_numbers = #tpu.dot_dimension_numbers<[1], [0], [0], [1], [0, 0, 1, 1], [], []>} : vector<8x32xbf16>, vector<32x64xbf16>, vector<8x64xf32> -> vector<8x64xf32>
    %c0_23 = arith.constant 0 : index
    %c0_24 = arith.constant 0 : index
    %76 = vector.load %arg9[%c0_23, %c0_24] : memref<1x64xf32, #tpu.memory_space<vmem>>, vector<1x64xf32>
    %77 = vector.broadcast %76 : vector<1x64xf32> to vector<8x64xf32>
    %78 = arith.addf %75, %77 : vector<8x64xf32>
    %79 = vector.extract_strided_slice %73 {offsets = [0, 0], sizes = [8, 8], strides = [1, 1]} : vector<8x32xf32> to vector<8x8xf32>
    %80 = vector.extract_strided_slice %73 {offsets = [0, 8], sizes = [8, 8], strides = [1, 1]} : vector<8x32xf32> to vector<8x8xf32>
    %81 = vector.extract_strided_slice %73 {offsets = [0, 16], sizes = [8, 8], strides = [1, 1]} : vector<8x32xf32> to vector<8x8xf32>
    %82 = vector.extract_strided_slice %73 {offsets = [0, 24], sizes = [8, 8], strides = [1, 1]} : vector<8x32xf32> to vector<8x8xf32>
    %83 = vector.shape_cast %79 : vector<8x8xf32> to vector<1x8x8xf32>
    %84 = vector.shape_cast %80 : vector<8x8xf32> to vector<1x8x8xf32>
    %85 = vector.shape_cast %81 : vector<8x8xf32> to vector<1x8x8xf32>
    %86 = vector.shape_cast %82 : vector<8x8xf32> to vector<1x8x8xf32>
    %87 = tpu.concatenate %83, %84, %85, %86 in 0 : vector<1x8x8xf32>, vector<1x8x8xf32>, vector<1x8x8xf32>, vector<1x8x8xf32> -> vector<4x8x8xf32>
    %88 = vector.extract_strided_slice %78 {offsets = [0, 0], sizes = [8, 32], strides = [1, 1]} : vector<8x64xf32> to vector<8x32xf32>
    %89 = vector.extract_strided_slice %88 {offsets = [0, 0], sizes = [8, 8], strides = [1, 1]} : vector<8x32xf32> to vector<8x8xf32>
    %90 = vector.extract_strided_slice %88 {offsets = [0, 8], sizes = [8, 8], strides = [1, 1]} : vector<8x32xf32> to vector<8x8xf32>
    %91 = vector.extract_strided_slice %88 {offsets = [0, 16], sizes = [8, 8], strides = [1, 1]} : vector<8x32xf32> to vector<8x8xf32>
    %92 = vector.extract_strided_slice %88 {offsets = [0, 24], sizes = [8, 8], strides = [1, 1]} : vector<8x32xf32> to vector<8x8xf32>
    %93 = vector.shape_cast %89 : vector<8x8xf32> to vector<1x8x8xf32>
    %94 = vector.shape_cast %90 : vector<8x8xf32> to vector<1x8x8xf32>
    %95 = vector.shape_cast %91 : vector<8x8xf32> to vector<1x8x8xf32>
    %96 = vector.shape_cast %92 : vector<8x8xf32> to vector<1x8x8xf32>
    %97 = tpu.concatenate %93, %94, %95, %96 in 0 : vector<1x8x8xf32>, vector<1x8x8xf32>, vector<1x8x8xf32>, vector<1x8x8xf32> -> vector<4x8x8xf32>
    %98 = vector.extract_strided_slice %78 {offsets = [0, 32], sizes = [8, 32], strides = [1, 1]} : vector<8x64xf32> to vector<8x32xf32>
    %99 = vector.extract_strided_slice %98 {offsets = [0, 0], sizes = [8, 8], strides = [1, 1]} : vector<8x32xf32> to vector<8x8xf32>
    %100 = vector.extract_strided_slice %98 {offsets = [0, 8], sizes = [8, 8], strides = [1, 1]} : vector<8x32xf32> to vector<8x8xf32>
    %101 = vector.extract_strided_slice %98 {offsets = [0, 16], sizes = [8, 8], strides = [1, 1]} : vector<8x32xf32> to vector<8x8xf32>
    %102 = vector.extract_strided_slice %98 {offsets = [0, 24], sizes = [8, 8], strides = [1, 1]} : vector<8x32xf32> to vector<8x8xf32>
    %103 = vector.shape_cast %99 : vector<8x8xf32> to vector<1x8x8xf32>
    %104 = vector.shape_cast %100 : vector<8x8xf32> to vector<1x8x8xf32>
    %105 = vector.shape_cast %101 : vector<8x8xf32> to vector<1x8x8xf32>
    %106 = vector.shape_cast %102 : vector<8x8xf32> to vector<1x8x8xf32>
    %107 = tpu.concatenate %103, %104, %105, %106 in 0 : vector<1x8x8xf32>, vector<1x8x8xf32>, vector<1x8x8xf32>, vector<1x8x8xf32> -> vector<4x8x8xf32>
    %108 = arith.truncf %87 : vector<4x8x8xf32> to vector<4x8x8xbf16>
    %109 = arith.truncf %97 : vector<4x8x8xf32> to vector<4x8x8xbf16>
    "tpu.trace_start"() <{level = 10 : i32, message = "hqd,hkd->hqk"}> : () -> ()
    %cst_25 = arith.constant dense<0.000000e+00> : vector<4x8x8xf32>
    %110 = tpu.matmul %108, %109, %cst_25 {dimension_numbers = #tpu.dot_dimension_numbers<[2], [2], [1], [1], [0, 0, 0, 1, 1, 1], [0], [0]>} : vector<4x8x8xbf16>, vector<4x8x8xbf16>, vector<4x8x8xf32> -> vector<4x8x8xf32>
    "tpu.trace_stop"() : () -> ()
    %cst_26 = arith.constant dense<0xFF800000> : vector<4x8xf32>
    %111 = vector.multi_reduction <maximumf>, %110, %cst_26 [2] : vector<4x8x8xf32> to vector<4x8xf32>
    %112 = vector.shape_cast %111 : vector<4x8xf32> to vector<4x8x1xf32>
    %113 = vector.broadcast %112 : vector<4x8x1xf32> to vector<4x8x8xf32>
    %114 = arith.subf %110, %113 : vector<4x8x8xf32>
    %115 = math.exp %114 : vector<4x8x8xf32>
    %cst_27 = arith.constant dense<0.000000e+00> : vector<4x8xf32>
    %116 = vector.multi_reduction <add>, %115, %cst_27 [2] : vector<4x8x8xf32> to vector<4x8xf32>
    %117 = vector.shape_cast %116 : vector<4x8xf32> to vector<4x8x1xf32>
    %118 = tpu.reciprocal %117 {approx = true} : vector<4x8x1xf32> -> vector<4x8x1xf32>
    %119 = vector.broadcast %118 : vector<4x8x1xf32> to vector<4x8x8xf32>
    %120 = arith.mulf %115, %119 : vector<4x8x8xf32>
    %121 = arith.truncf %120 : vector<4x8x8xf32> to vector<4x8x8xbf16>
    %122 = arith.truncf %107 : vector<4x8x8xf32> to vector<4x8x8xbf16>
    "tpu.trace_start"() <{level = 10 : i32, message = "hqk,hkd->hqd"}> : () -> ()
    %cst_28 = arith.constant dense<0.000000e+00> : vector<4x8x8xf32>
    %123 = tpu.matmul %121, %122, %cst_28 {dimension_numbers = #tpu.dot_dimension_numbers<[2], [1], [1], [2], [0, 0, 0, 1, 1, 2], [0], [0]>} : vector<4x8x8xbf16>, vector<4x8x8xbf16>, vector<4x8x8xf32> -> vector<4x8x8xf32>
    "tpu.trace_stop"() : () -> ()
    %124 = vector.extract_strided_slice %123 {offsets = [0, 0, 0], sizes = [1, 8, 8], strides = [1, 1, 1]} : vector<4x8x8xf32> to vector<1x8x8xf32>
    %125 = vector.shape_cast %124 : vector<1x8x8xf32> to vector<8x8xf32>
    %126 = vector.extract_strided_slice %123 {offsets = [1, 0, 0], sizes = [1, 8, 8], strides = [1, 1, 1]} : vector<4x8x8xf32> to vector<1x8x8xf32>
    %127 = vector.shape_cast %126 : vector<1x8x8xf32> to vector<8x8xf32>
    %128 = vector.extract_strided_slice %123 {offsets = [2, 0, 0], sizes = [1, 8, 8], strides = [1, 1, 1]} : vector<4x8x8xf32> to vector<1x8x8xf32>
    %129 = vector.shape_cast %128 : vector<1x8x8xf32> to vector<8x8xf32>
    %130 = vector.extract_strided_slice %123 {offsets = [3, 0, 0], sizes = [1, 8, 8], strides = [1, 1, 1]} : vector<4x8x8xf32> to vector<1x8x8xf32>
    %131 = vector.shape_cast %130 : vector<1x8x8xf32> to vector<8x8xf32>
    %132 = tpu.concatenate %125, %127, %129, %131 in 1 : vector<8x8xf32>, vector<8x8xf32>, vector<8x8xf32>, vector<8x8xf32> -> vector<8x32xf32>
    %133 = arith.truncf %132 : vector<8x32xf32> to vector<8x32xbf16>
    %c0_29 = arith.constant 0 : index
    %c0_30 = arith.constant 0 : index
    %134 = vector.load %arg10[%c0_29, %c0_30] : memref<32x128xbf16, #tpu.memory_space<vmem>>, vector<32x128xbf16>
    %cst_31 = arith.constant dense<0.000000e+00> : vector<8x128xf32>
    %135 = tpu.matmul %133, %134, %cst_31 {dimension_numbers = #tpu.dot_dimension_numbers<[1], [0], [0], [1], [0, 0, 1, 1], [], []>} : vector<8x32xbf16>, vector<32x128xbf16>, vector<8x128xf32> -> vector<8x128xf32>
    %c0_32 = arith.constant 0 : index
    %c0_33 = arith.constant 0 : index
    %136 = vector.load %arg11[%c0_32, %c0_33] : memref<1x128xf32, #tpu.memory_space<vmem>>, vector<1x128xf32>
    %137 = vector.broadcast %136 : vector<1x128xf32> to vector<8x128xf32>
    %138 = arith.addf %135, %137 : vector<8x128xf32>
    %139 = arith.truncf %138 : vector<8x128xf32> to vector<8x128xbf16>
    %c0_34 = arith.constant 0 : index
    %c0_35 = arith.constant 0 : index
    %140 = vector.load %arg12[%c0_34, %c0_35] : memref<128x32xbf16, #tpu.memory_space<vmem>>, vector<128x32xbf16>
    %cst_36 = arith.constant dense<0.000000e+00> : vector<8x32xf32>
    %141 = tpu.matmul %139, %140, %cst_36 {dimension_numbers = #tpu.dot_dimension_numbers<[1], [0], [0], [1], [0, 0, 1, 1], [], []>} : vector<8x128xbf16>, vector<128x32xbf16>, vector<8x32xf32> -> vector<8x32xf32>
    %c0_37 = arith.constant 0 : index
    %c0_38 = arith.constant 0 : index
    %142 = vector.load %arg13[%c0_37, %c0_38] : memref<1x32xf32, #tpu.memory_space<vmem>>, vector<1x32xf32>
    %143 = vector.broadcast %142 : vector<1x32xf32> to vector<8x32xf32>
    %144 = arith.addf %141, %143 : vector<8x32xf32>
    %c0_39 = arith.constant 0 : index
    %c0_40 = arith.constant 0 : index
    %c0_41 = arith.constant 0 : index
    %145 = vector.load %arg14[%c0_39, %c0_40, %c0_41] : memref<1x8x32xf32, #tpu.memory_space<vmem>>, vector<1x8x32xf32>
    %146 = vector.shape_cast %145 : vector<1x8x32xf32> to vector<8x32xf32>
    %147 = vector.shape_cast %144 : vector<8x32xf32> to vector<1x8x32xf32>
    tpu.vector_store %arg14[%c0_39, %c0_40, %c0_41], %147 {strides = array<i32>} : memref<1x8x32xf32, #tpu.memory_space<vmem>>, vector<1x8x32xf32>,
    return
  }
  func.func @transform_0(%arg0: i32) -> (i32, i32, i32) {
    %c0_i32 = arith.constant 0 : i32
    %c0_i32_0 = arith.constant 0 : i32
    %c0_i32_1 = arith.constant 0 : i32
    return %arg0, %c0_i32, %c0_i32_0 : i32, i32, i32
  }
  func.func @transform_1(%arg0: i32) -> (i32, i32, i32) {
    %c0_i32 = arith.constant 0 : i32
    %c0_i32_0 = arith.constant 0 : i32
    %c0_i32_1 = arith.constant 0 : i32
    return %arg0, %c0_i32, %c0_i32_0 : i32, i32, i32
  }
  func.func @transform_2(%arg0: i32) -> (i32, i32) {
    %c0_i32 = arith.constant 0 : i32
    %c0_i32_0 = arith.constant 0 : i32
    %c0_i32_1 = arith.constant 0 : i32
    return %c0_i32, %c0_i32_0 : i32, i32
  }
  func.func @transform_3(%arg0: i32) -> (i32, i32) {
    %c0_i32 = arith.constant 0 : i32
    %c0_i32_0 = arith.constant 0 : i32
    %c0_i32_1 = arith.constant 0 : i32
    return %c0_i32, %c0_i32_0 : i32, i32
  }
  func.func @transform_4(%arg0: i32) -> (i32, i32) {
    %c0_i32 = arith.constant 0 : i32
    %c0_i32_0 = arith.constant 0 : i32
    %c0_i32_1 = arith.constant 0 : i32
    return %c0_i32, %c0_i32_0 : i32, i32
  }
  func.func @transform_5(%arg0: i32) -> (i32, i32) {
    %c0_i32 = arith.constant 0 : i32
    %c0_i32_0 = arith.constant 0 : i32
    %c0_i32_1 = arith.constant 0 : i32
    return %c0_i32, %c0_i32_0 : i32, i32
  }
  func.func @transform_6(%arg0: i32) -> (i32, i32) {
    %c0_i32 = arith.constant 0 : i32
    %c0_i32_0 = arith.constant 0 : i32
    %c0_i32_1 = arith.constant 0 : i32
    return %c0_i32, %c0_i32_0 : i32, i32
  }
  func.func @transform_7(%arg0: i32) -> (i32, i32) {
    %c0_i32 = arith.constant 0 : i32
    %c0_i32_0 = arith.constant 0 : i32
    %c0_i32_1 = arith.constant 0 : i32
    return %c0_i32, %c0_i32_0 : i32, i32
  }
  func.func @transform_8(%arg0: i32) -> (i32, i32) {
    %c0_i32 = arith.constant 0 : i32
    %c0_i32_0 = arith.constant 0 : i32
    %c0_i32_1 = arith.constant 0 : i32
    return %c0_i32, %c0_i32_0 : i32, i32
  }
  func.func @transform_9(%arg0: i32) -> (i32, i32) {
    %c0_i32 = arith.constant 0 : i32
    %c0_i32_0 = arith.constant 0 : i32
    %c0_i32_1 = arith.constant 0 : i32
    return %c0_i32, %c0_i32_0 : i32, i32
  }
  func.func @transform_10(%arg0: i32) -> (i32, i32) {
    %c0_i32 = arith.constant 0 : i32
    %c0_i32_0 = arith.constant 0 : i32
    %c0_i32_1 = arith.constant 0 : i32
    return %c0_i32, %c0_i32_0 : i32, i32
  }
  func.func @transform_11(%arg0: i32) -> (i32, i32) {
    %c0_i32 = arith.constant 0 : i32
    %c0_i32_0 = arith.constant 0 : i32
    %c0_i32_1 = arith.constant 0 : i32
    return %c0_i32, %c0_i32_0 : i32, i32
  }
  func.func @transform_12(%arg0: i32) -> (i32, i32) {
    %c0_i32 = arith.constant 0 : i32
    %c0_i32_0 = arith.constant 0 : i32
    %c0_i32_1 = arith.constant 0 : i32
    return %c0_i32, %c0_i32_0 : i32, i32
  }
  func.func @transform_13(%arg0: i32) -> (i32, i32, i32) {
    %c0_i32 = arith.constant 0 : i32
    %c0_i32_0 = arith.constant 0 : i32
    %c0_i32_1 = arith.constant 0 : i32
    return %arg0, %c0_i32, %c0_i32_0 : i32, i32, i32
  }
}

</mosaic_0001>

<bundles_post_ra>
// kernel: tpu_custom_call.1
= control target key start
LH: loop header
LB: loop body
LE: loop exit
PB: predicated region body
PF: predicated region fallthrough
CT: control target
= control target key end

     0   :  { %s2805_s0 = inlined_call_operand.vmem [shape: bf16[2,8,32], index: 0, kind: input, shape index: {}]   ;;  %s2806_s1 = inlined_call_operand.vmem [shape: bf16[2,8,32], index: 1, kind: input, shape index: {}]   ;;  %s2807_s2 = inlined_call_operand.hbm [shape: f32[8,8], index: 2, kind: input, shape index: {}]   ;;  %s2808_s3 = inlined_call_operand.vmem [shape: bf16[32,96], index: 3, kind: input, shape index: {}]   ;;  %s2809_s4 = inlined_call_operand.vmem [shape: f32[1,96], index: 4, kind: input, shape index: {}]   ;;  %s2810_s5 = inlined_call_operand.vmem [shape: bf16[32,32], index: 5, kind: input, shape index: {}]   ;;  %s2811_s6 = inlined_call_operand.vmem [shape: f32[1,32], index: 6, kind: input, shape index: {}]   ;;  %s2812_s7 = inlined_call_operand.vmem [shape: bf16[32,64], index: 7, kind: input, shape index: {}]   ;;  %s2813_s8 = inlined_call_operand.vmem [shape: f32[1,64], index: 8, kind: input, shape index: {}]   ;;  %s2814_s9 = inlined_call_operand.vmem [shape: bf16[32,128], index: 9, kind: input, shape index: {}]   ;;  %s2815_s10 = inlined_call_operand.vmem [shape: f32[1,128], index: 10, kind: input, shape index: {}]   ;;  %s2816_s11 = inlined_call_operand.vmem [shape: bf16[128,32], index: 11, kind: input, shape index: {}]   ;;  %s2817_s12 = inlined_call_operand.vmem [shape: f32[1,32], index: 12, kind: input, shape index: {}]   ;;  %s2818_s13 = inlined_call_operand.hbm [shape: f32[2,8,32], index: 13, kind: output, shape index: {}]  }
   0x1   :  { %2829 = sst [smem:[#allocation8_spill]] %s2805_s0 }
   0x2   :  { %2830 = sst [smem:[#allocation9_spill]] %s2806_s1 }
   0x3   :  { %2831 = sst [smem:[#allocation10_spill]] %s2807_s2 }
   0x4   :  { %18 = vsyncpa [#allocation3], 0 }
   0x5   :  { %19 = vsyncpa [#allocation4], 0 }
   0x6   :  { %21 = vsyncpa [#allocation4 + $0x1], 0  ;;  %s2424_s25 = smov 0   ;;  %s2426_s26 = smov 0  }
   0x7   :  { %s2428_s27 = smov 0   ;;  %s2430_s28 = smov 0  }
   0x8 LB: > { %s2445_s29 = sadd.s32 4294967295, %s2340_s28   ;;  %s1887_s30 = sadd.s32 4294967294, %s2340_s28   ;;  %s2340_s28 = sphi %s2430_s28, %s2848_s28   ;;  %s2336_s27 = sphi %s2428_s27, %s2847_s27   ;;  %s2332_s26 = sphi %s2426_s26, %s2846_s26   ;;  %s2328_s25 = sphi %s2424_s25, %s2845_s25  }
   0x9   : > { %s2449_s14 = sadd.s32 1, %s2340_s28   ;;  %s317_s15 = sadd.s32 1, %s2336_s27 }
   0xa   : > { %s314_s16 = ssub.s32 %s2340_s28, %s2449_s14  ;;  %p327_p0 = scmp.ne.s32.totalorder %s2336_s27, %s2332_s26 }
   0xb   : > { %p315_p1 = scmp.eq.s32.totalorder %s314_s16, 0  ;;  %p328_p2 = scmp.eq.s32.totalorder %s2445_s29, 1 }
   0xc   : > { %p333_p3 = scmp.ne.s32.totalorder %s2332_s26, %s2328_s25  ;;  %p334_p4 = scmp.eq.s32.totalorder %s1887_s30, 1 }
   0xd   : > { %s2460_s17 = scalar_select %p315_p1, %s2336_s27, %s317_s15  }
   0xe   : > { %p2462_p5 = por %p328_p2, %p327_p0  ;;  %p2466_p6 = por %p334_p4, %p333_p3 }
   0xf   : > { %p1888_p7 = scmp.ge.s32.totalorder %s2340_s28, 1  ;;  %p341_p8 = scmp.lt.s32.totalorder %s2340_s28, 3 }
  0x10   : > { %s2833_s19 = scalar_select %p2466_p6, 1, 0 }
  0x11   : > { %p2156_p9 = scmp.eq.s32.totalorder %s2445_s29, 0  ;;  %p2473_p10 = pnand %p1888_p7, %p341_p8 }
  0x12   : > { %s2342_s21 = smov [#allocation2]  }
  0x13   : > { %s354_s22 = sshll.u32 %s2342_s21, 4  ;;  %p2148_p11 = pneg %p2473_p10  ;;  %s355_s22 = int_to_ptr.vmem [resolvable:$true] %s354_s22 }
  0x14   : > { %s2261_s23 = scalar_lea.vmem %s355_s22, 128  ;;  %p2269_p3 = scmp.lt.s32.totalorder %s355_s22, %s355_s22 }
  0x15   : > { %p2149_p12 = pnand %p2156_p9, %p2148_p11  ;;  %p2262_p0 = scmp.ne.s32.totalorder %s355_s22, %s2261_s23 }
  0x16   : > { %p2270_p4 = scmp.lt.s32.totalorder %s2261_s23, %s2261_s23 }
  0x17   : > { %p2252_p13 = pneg %p2149_p12 }
  0x18   : > { %p2271_p6 = por %p2270_p4, %p2269_p3 }
  0x19   : > { %p2264_p1 = pnand %p2262_p0, %p2252_p13 }
  0x1b   : > { %p2265_p2 = pneg %p2264_p1 }
  0x1d   : > { %p2272_p7 = pnand %p2271_p6, %p2265_p2 }
  0x1f   : > { %2275 = shalt.err (!%p2272_p7)
}
  0x20   : > { %s2835_s2 = sld [smem:[#allocation10_spill]] }
  0x22   : > { %411 = sbr.rel (%p2473_p10) target bundleno = 2858 (0xb2a), region = 72 }
  0x26   : > { %2151 = dma.hbm_to_vmem [thread:$0]  (!%p2149_p12), %s2835_s2, 128, %s355_s22, [#allocation3]  }
  0x27   : > { %2319 = dma.done.wait (%p2156_p9), [#allocation3], 128  }
  0x28   : > { %2321 = vsyncadd (%p2156_p9), [#allocation3], 4294967168  ;;  %p458_p8 = scmp.lt.s32.totalorder %s2445_s29, 1  ;;  %v2343_v0 = vmov 0.0   ;;  %vm2344_vm0 = vmmov 0   ;;  %v2202_v1 = vld [vmem:[%s2808_s3 + $0x8] sm:$0xff]  }
  0x29   : > { %1994 = vmatprep.subr.bf16.mxu1 %v2343_v0  ;;  %1998 = vmatprep.mubr.msk.bf16.mxu1 %vm2344_vm0, %v2343_v0  ;;  %s2836_s0 = sld [smem:[#allocation8_spill]]  ;;  %v2203_v2 = vld [vmem:[%s2808_s3] sm:$0xff]   ;;  %vm492_vm1 = vcmask 261120   ;;  %s2821_s2 = smov 104   ;;  %vm554_vm2 = vcmask 64512   ;;  %vm801_vm3 = vcmask 1043456  }
  0x2a   : > { %s2495_s15 = scalar_select %p458_p8, %s2445_s29, 1  ;;  %2020 = vmatprep.subr.bf16.mxu0 %v2343_v0  ;;  %2022 = vmatprep.mubr.msk.bf16.mxu0 %vm2344_vm0, %v2343_v0  ;;  %v1896_v4 = vld [vmem:[%s2809_s4] ss:$0 sm:$0xff]  ;;  %vm1002_vm4 = vcmask 130048   ;;  %vm1004_vm5 = vcmask 195584  }
  0x2b   : > { %1995 = vmatpush3.bf16.msra.mxu1 %v2202_v1  ;;  %s2823_s22 = smov 120   ;;  %s2825_s23 = smov 112   ;;  %v550_v25 = vld [vmem:[#allocation2] sm:$0xff] }
  0x2c   : > { %s1894_s16 = sshll.u32 %s2495_s15, 2  ;;  %1996 = vmatprep.subr.bf16.mxu1 %v2343_v0  ;;  %s2349_s30 = smov 64  }
  0x2d   : > { %s2837_s1 = sld [smem:[#allocation9_spill]]  ;;  %s2828_s20 = smov 16  }
  0x2e   : > { %s2838_s15 = smov 112   ;;  %s455_s21 = sand.u32 1, %s2332_s26  }
  0x2f   : > { %s461_s24 = scalar_lea.vmem %s2836_s0, %s1894_s16  ;;  %1997 = vmatpush3.bf16.msra.mxu1 %v2203_v2 }
  0x30   : > { %v467_v3 = vld [vmem:[%s461_s24] sm:$0xf]  ;;  %2002 = vmatprep.subr.bf16.mxu1 %v2343_v0  ;;  %s2819_s24 = smov 96  }
  0x32   : > { %1999 = vmatmul.mubr.msk.bf16.vlgmr.msra.gmra.mxu1 %vm492_vm1, %v467_v3 }
  0x33   : > { %2004 = vmatprep.mubr.msk.bf16.mxu1 %vm2344_vm0, %v2343_v0 }
  0xf2   : > { %v530_v5 = vpop.f32.mrf.mxu1 }
  0xf3   : > { %v531_v6 = vadd.f32 %v1896_v4, %v530_v5 }
  0xf4   : > { %v2000_v7 = vpop.f32.mrf.mxu1 }
  0xf5   : > { %543 = vrot.lane.b32.xlu1 %v531_v6, %s2821_s2  ;;  %537 = vrot.lane.b32.xlu0 %v531_v6, %s2823_s22  ;;  %v2522_v9 = vpack.c.bf16 %v531_v6, %v531_v6  ;;  %s2350_s22 = smov 8  }
  0xf6   : > { %v533_v8 = vpop.f32.mrf.mxu1 }
  0xf8   : > { %v2001_v10 = vpop.f32.mrf.mxu1 }
  0xf9   : > { %540 = vrot.lane.b32.xlu0 %v531_v6, %s2825_s23  ;;  %552 = vrot.lane.b32.xlu1 %v2522_v9, %s2819_s24  ;;  %s465_s23 = scalar_lea.vmem %s2837_s1, %s1894_s16  ;;  %s2840_s16 = smov 104  }
 0x167   : > { %v544_v11 = vpop.permute.xlu1 %543  ;;  %v538_v12 = vpop.permute.xlu0 %537 }
 0x168   : > { %v547_v13 = vpack.c.bf16 %v538_v12, %v538_v12  ;;  %v2528_v16 = vpack.c.bf16 %v544_v11, %v544_v11 }
 0x16a   : > { %602 = vrot.lane.b32.xlu0 %v547_v13, %s2819_s24 }
 0x16b   : > { %v541_v14 = vpop.permute.xlu0 %540  ;;  %v553_v15 = vpop.permute.xlu1 %552 }
 0x16c   : > { %v2530_v17 = vpack.c.bf16 %v541_v14, %v541_v14  ;;  %v559_v18 = vsel %vm554_vm2, %v553_v15, 0 }
 0x16d   : > { %2003 = vmatpush3.bf16.xpose.msra.mxu1 %v559_v18 }
 0x16e   : > { %700 = vrot.lane.b32.xlu0 %v2528_v16, %s2819_s24  ;;  %651 = vrot.lane.b32.xlu1 %v2530_v17, %s2819_s24  ;;  %s2839_s24 = smov 120  }
 0x16f   : > { %2008 = vmatprep.subr.bf16.mxu1 %v2343_v0 }
 0x174   : > { %2005 = vmatmul.mubr.msk.bf16.vlgmr.msra.gmra.mxu1 %vm554_vm2, %v2522_v9 }
 0x175   : > { %2010 = vmatprep.mubr.msk.bf16.mxu1 %vm2344_vm0, %v2343_v0 }
 0x1dc   : > { %v603_v19 = vpop.permute.xlu0 %602 }
 0x1dd   : > { %v608_v20 = vsel %vm554_vm2, %v603_v19, 0 }
 0x1de   : > { %2009 = vmatpush3.bf16.xpose.msra.mxu1 %v608_v20 }
 0x1df   : > { %2014 = vmatprep.subr.bf16.mxu1 %v2343_v0 }
 0x1e0   : > { %v701_v21 = vpop.permute.xlu0 %700  ;;  %v652_v23 = vpop.permute.xlu1 %651 }
 0x1e1   : > { %v706_v22 = vsel %vm554_vm2, %v701_v21, 0  ;;  %v657_v24 = vsel %vm554_vm2, %v652_v23, 0 }
 0x1e2   : > { %2021 = vmatpush3.bf16.xpose.msra.mxu0 %v706_v22 }
 0x1e3   : > { %2032 = vmatprep.subr.bf16.mxu0 %v2343_v0 }
 0x1e5   : > { %2011 = vmatmul.mubr.msk.bf16.vlgmr.msra.gmra.mxu1 %vm554_vm2, %v547_v13 }
 0x1e6   : > { %2015 = vmatpush3.bf16.xpose.msra.mxu1 %v657_v24  ;;  %2016 = vmatprep.mubr.msk.bf16.mxu1 %vm2344_vm0, %v2343_v0 }
 0x1e7   : > { %2026 = vmatprep.subr.bf16.mxu1 %v2343_v0 }
 0x1e9   : > { %2023 = vmatmul.mubr.msk.bf16.vlgmr.msra.gmra.mxu0 %vm554_vm2, %v2528_v16 }
 0x1ea   : > { %2034 = vmatprep.mubr.msk.bf16.mxu0 %vm2344_vm0, %v2343_v0 }
 0x1ed   : > { %2017 = vmatmul.mubr.msk.bf16.vlgmr.msra.gmra.mxu1 %vm554_vm2, %v2530_v17 }
 0x1ee   : > { %2028 = vmatprep.mubr.msk.bf16.mxu1 %vm2344_vm0, %v2343_v0 }
 0x234   : > { %v595_v26 = vpop.f32.mrf.mxu1 }
 0x235   : > { %v596_v27 = vadd.f32 %v595_v26, %v550_v25 }
 0x236   : > { %v2006_v28 = vpop.f32.mrf.mxu1 }
 0x237   : > { %v748_v29 = vsel %vm554_vm2, %v596_v27, -inf }
 0x238   : > { %749 = vmax.xlane.f32.xlu1 %v748_v29  ;;  %v598_v30 = vpop.f32.mrf.mxu1 }
 0x23a   : > { %v2007_v31 = vpop.f32.mrf.mxu1 }
 0x23b   : > { %v2204_v31 = vld [vmem:[%s2812_s7 + $0x8] sm:$0xff]  }
 0x2a5   : > { %v644_v32 = vpop.f32.mrf.mxu1 }
 0x2a6   : > { %v645_v33 = vadd.f32 %v644_v32, %v550_v25  ;;  %v2205_v32 = vld [vmem:[%s2812_s7] sm:$0xff]  }
 0x2a7   : > { %v2012_v34 = vpop.f32.mrf.mxu1 }
 0x2a8   : > { %v751_v35 = vsel %vm554_vm2, %v645_v33, -inf }
 0x2a9   : > { %v742_v36 = vpop.f32.mrf.mxu0  ;;  %752 = vmax.xlane.f32.xlu0 %v751_v35  ;;  %v647_v37 = vpop.f32.mrf.mxu1 }
 0x2aa   : > { %v743_v38 = vadd.f32 %v742_v36, %v550_v25 }
 0x2ab   : > { %v2013_v39 = vpop.f32.mrf.mxu1  ;;  %v2024_v40 = vpop.f32.mrf.mxu0 }
 0x2ac   : > { %v757_v41 = vsel %vm554_vm2, %v743_v38, -inf  ;;  %v2207_v39 = vld [vmem:[%s2810_s5] sm:$0xff]  }
 0x2ad   : > { %v745_v42 = vpop.f32.mrf.mxu0  ;;  %758 = vmax.xlane.f32.xlu1 %v757_v41  ;;  %v693_v43 = vpop.f32.mrf.mxu1 }
 0x2ae   : > { %v694_v44 = vadd.f32 %v693_v43, %v550_v25 }
 0x2af   : > { %v2018_v45 = vpop.f32.mrf.mxu1  ;;  %v2025_v46 = vpop.f32.mrf.mxu0 }
 0x2b0   : > { %v754_v47 = vsel %vm554_vm2, %v694_v44, -inf }
 0x2b1   : > { %755 = vmax.xlane.f32.xlu0 %v754_v47  ;;  %v696_v48 = vpop.f32.mrf.mxu1 }
 0x2b3   : > { %v2019_v49 = vpop.f32.mrf.mxu1 }
 0x2be   : > { %845 = vrot.lane.b32.xlu1 %v547_v13, %s2349_s30 }
 0x2c1   : > { %v750_v50 = vpop.xlane.xlu1 %749 }
 0x2c2   : > { %v760_v51 = vsub.f32 %v596_v27, %v750_v50 }
 0x2c4   : > { %v764_v52 = vmul.f32 1.442695, %v760_v51 }
 0x2c6   : > { %2218 = vpow2.f32 %v764_v52  ;;  %v1912_v52 = vld [vmem:[%s2813_s8] ss:$0 sm:$0xff] }
 0x2c7   : > { %796 = vrot.lane.b32.xlu0 %v2522_v9, %s2349_s30 }
 0x2d3   : > { %v2219_v53 = vpop.eup %2218 }
 0x2d4   : > { %v772_v54 = vsel %vm554_vm2, %v2219_v53, 0.0 }
 0x2e6   : > { %773 = vadd.xlane.f32.xlu0 %v772_v54 }
 0x332   : > { %v753_v55 = vpop.xlane.xlu0 %752 }
 0x333   : > { %v761_v56 = vsub.f32 %v645_v33, %v753_v55  ;;  %v468_v33 = vld [vmem:[%s465_s23] sm:$0xf]  ;;  %s2827_s23 = smov 24  }
 0x335   : > { %v766_v57 = vmul.f32 1.442695, %v761_v56 }
 0x336   : > { %v759_v58 = vpop.xlane.xlu1 %758 }
 0x337   : > { %2220 = vpow2.f32 %v766_v57  ;;  %v763_v59 = vsub.f32 %v743_v38, %v759_v58  ;;  %v2206_v38 = vld [vmem:[%s2810_s5 + $0x8] sm:$0xff]  }
 0x339   : > { %v770_v60 = vmul.f32 1.442695, %v763_v59 }
 0x33a   : > { %v846_v61 = vpop.permute.xlu1 %845  ;;  %v756_v62 = vpop.xlane.xlu0 %755 }
 0x33b   : > { %2222 = vpow2.f32 %v770_v60  ;;  %v851_v63 = vsel %vm801_vm3, %v846_v61, 0  ;;  %v762_v1 = vsub.f32 %v694_v44, %v756_v62 }
 0x33c   : > { %2033 = vmatpush3.bf16.msra.mxu0 %v851_v63 }
 0x33d   : > { %v768_v2 = vmul.f32 1.442695, %v762_v1  ;;  %2044 = vmatprep.subr.bf16.mxu0 %v2343_v0 }
 0x33e   : > { %v797_v3 = vpop.permute.xlu0 %796 }
 0x33f   : > { %2224 = vpow2.f32 %v768_v2  ;;  %v803_v4 = vsel %vm801_vm3, %v797_v3, 0 }
 0x340   : > { %2027 = vmatpush3.bf16.msra.mxu1 %v803_v4 }
 0x341   : > { %2038 = vmatprep.subr.bf16.mxu1 %v2343_v0 }
 0x344   : > { %v2221_v5 = vpop.eup %2220 }
 0x345   : > { %v775_v6 = vsel %vm554_vm2, %v2221_v5, 0.0 }
 0x346   : > { %776 = vadd.xlane.f32.xlu1 %v775_v6 }
 0x348   : > { %v2223_v7 = vpop.eup %2222 }
 0x349   : > { %v781_v8 = vsel %vm554_vm2, %v2223_v7, 0.0 }
 0x34a   : > { %782 = vadd.xlane.f32.xlu1 %v781_v8 }
 0x34c   : > { %v2225_v9 = vpop.eup %2224 }
 0x34d   : > { %v778_v10 = vsel %vm554_vm2, %v2225_v9, 0.0 }
 0x34e   : > { %779 = vadd.xlane.f32.xlu0 %v778_v10 }
 0x35b   : > { %893 = vrot.lane.b32.xlu1 %v2530_v17, %s2349_s30 }
 0x364   : > { %941 = vrot.lane.b32.xlu0 %v2528_v16, %s2349_s30  ;;  %s2841_s30 = smov 96  }
 0x36f   : > { %v774_v11 = vpop.xlane.xlu0 %773 }
 0x370   : > { %2226 = vrcp.f32 %v774_v11 }
 0x37d   : > { %v2227_v12 = vpop.eup %2226 }
 0x37e   : > { %v788_v13 = vmul.f32 %v2227_v12, %v2219_v53 }
 0x380   : > { %v792_v14 = vpack.c.bf16 %v788_v13, %v788_v13 }
 0x382   : > { %2029 = vmatmul.mubr.msk.bf16.vlgmr.msra.gmra.mxu1 %vm554_vm2, %v792_v14 }
 0x383   : > { %2040 = vmatprep.mubr.msk.bf16.mxu1 %vm2344_vm0, %v2343_v0 }
 0x3cf   : > { %v777_v15 = vpop.xlane.xlu1 %776 }
 0x3d0   : > { %2228 = vrcp.f32 %v777_v15 }
 0x3d3   : > { %v783_v18 = vpop.xlane.xlu1 %782 }
 0x3d4   : > { %2230 = vrcp.f32 %v783_v18 }
 0x3d7   : > { %v894_v19 = vpop.permute.xlu1 %893  ;;  %v780_v20 = vpop.xlane.xlu0 %779 }
 0x3d8   : > { %v899_v17 = vsel %vm801_vm3, %v894_v19, 0  ;;  %2232 = vrcp.f32 %v780_v20 }
 0x3d9   : > { %2039 = vmatpush3.bf16.msra.mxu1 %v899_v17 }
 0x3da   : > { %2050 = vmatprep.subr.bf16.mxu1 %v2343_v0 }
 0x3db   : > { %v942_v22 = vpop.permute.xlu0 %941 }
 0x3dc   : > { %v947_v25 = vsel %vm801_vm3, %v942_v22, 0 }
 0x3dd   : > { %v2229_v16 = vpop.eup %2228 }
 0x3de   : > { %v789_v21 = vmul.f32 %v2229_v16, %v2221_v5 }
 0x3e0   : > { %v793_v23 = vpack.c.bf16 %v789_v21, %v789_v21 }
 0x3e1   : > { %v2231_v24 = vpop.eup %2230 }
 0x3e2   : > { %2035 = vmatmul.mubr.msk.bf16.vlgmr.msra.gmra.mxu0 %vm554_vm2, %v793_v23  ;;  %v791_v26 = vmul.f32 %v2231_v24, %v2223_v7  ;;  %v1908_v7 = vld [vmem:[%s2811_s6] ss:$0 sm:$0xff] }
 0x3e3   : > { %2045 = vmatpush3.bf16.msra.mxu0 %v947_v25  ;;  %2046 = vmatprep.mubr.msk.bf16.mxu0 %vm2344_vm0, %v2343_v0 }
 0x3e4   : > { %2058 = vmatprep.subr.bf16.mxu0 %v2343_v0  ;;  %v795_v30 = vpack.c.bf16 %v791_v26, %v791_v26 }
 0x3e5   : > { %v2233_v27 = vpop.eup %2232 }
 0x3e6   : > { %v790_v28 = vmul.f32 %v2233_v27, %v2225_v9 }
 0x3e8   : > { %v794_v29 = vpack.c.bf16 %v790_v28, %v790_v28 }
 0x3ea   : > { %2041 = vmatmul.mubr.msk.bf16.vlgmr.msra.gmra.mxu1 %vm554_vm2, %v794_v29  ;;  %2047 = vmatmul.mubr.msk.bf16.vlgmr.msra.gmra.mxu0 %vm554_vm2, %v795_v30 }
 0x3eb   : > { %2062 = vmatprep.mubr.msk.bf16.mxu0 %vm2344_vm0, %v2343_v0  ;;  %2054 = vmatprep.mubr.msk.bf16.mxu1 %vm2344_vm0, %v2343_v0 }
 0x3ec   : > { %2059 = vmatpush3.bf16.msra.mxu0 %v2204_v31  ;;  %2051 = vmatpush3.bf16.msra.mxu1 %v2206_v38 }
 0x3ed   : > { %2060 = vmatprep.subr.bf16.mxu0 %v2343_v0  ;;  %2052 = vmatprep.subr.bf16.mxu1 %v2343_v0 }
 0x3f0   : > { %2061 = vmatpush3.bf16.msra.mxu0 %v2205_v32  ;;  %2053 = vmatpush3.bf16.msra.mxu1 %v2207_v39 }
 0x3f1   : > { %2072 = vmatprep.subr.bf16.mxu0 %v2343_v0  ;;  %2066 = vmatprep.subr.bf16.mxu1 %v2343_v0 }
 0x3f3   : > { %2063 = vmatmul.mubr.msk.bf16.vlgmr.msra.gmra.mxu0 %vm492_vm1, %v468_v33 }
 0x3f4   : > { %2074 = vmatprep.mubr.msk.bf16.mxu0 %vm2344_vm0, %v2343_v0 }
 0x442   : > { %v839_v34 = vpop.f32.mrf.mxu1 }
 0x444   : > { %v2030_v35 = vpop.f32.mrf.mxu1 }
 0x446   : > { %v842_v36 = vpop.f32.mrf.mxu1 }
 0x448   : > { %v2031_v37 = vpop.f32.mrf.mxu1 }
 0x4a2   : > { %v887_v40 = vpop.f32.mrf.mxu0 }
 0x4a3   : > { %990 = vrot.lane.b32.xlu1 %v887_v40, %s2350_s22 }
 0x4a4   : > { %v2036_v41 = vpop.f32.mrf.mxu0 }
 0x4a6   : > { %v890_v42 = vpop.f32.mrf.mxu0 }
 0x4a8   : > { %v2037_v43 = vpop.f32.mrf.mxu0 }
 0x4aa   : > { %v935_v44 = vpop.f32.mrf.mxu1  ;;  %v983_v45 = vpop.f32.mrf.mxu0 }
 0x4ab   : > { %998 = vrot.lane.b32.xlu1 %v983_v45, %s2827_s23  ;;  %994 = vrot.lane.b32.xlu0 %v935_v44, %s2828_s20 }
 0x4ac   : > { %v2042_v46 = vpop.f32.mrf.mxu1  ;;  %v2048_v47 = vpop.f32.mrf.mxu0 }
 0x4ae   : > { %v938_v48 = vpop.f32.mrf.mxu1  ;;  %v986_v49 = vpop.f32.mrf.mxu0 }
 0x4b0   : > { %v2043_v50 = vpop.f32.mrf.mxu1  ;;  %v2049_v51 = vpop.f32.mrf.mxu0 }
 0x4b3   : > { %v1133_v53 = vpop.f32.mrf.mxu0 }
 0x4b4   : > { %v1134_v54 = vadd.f32 %v1912_v52, %v1133_v53 }
 0x4b5   : > { %v2064_v55 = vpop.f32.mrf.mxu0 }
 0x4b6   : > { %1153 = vrot.lane.b32.xlu1 %v1134_v54, %s2838_s15  ;;  %1150 = vrot.lane.b32.xlu0 %v1134_v54, %s2839_s24  ;;  %v2627_v59 = vpack.c.bf16 %v1134_v54, %v1134_v54 }
 0x4b7   : > { %v1136_v56 = vpop.f32.mrf.mxu0 }
 0x4b8   : > { %v1171_v3 = vsel %vm554_vm2, %v2627_v59, 0 }
 0x4b9   : > { %v2065_v57 = vpop.f32.mrf.mxu0 }
 0x4ba   : > { %1156 = vrot.lane.b32.xlu1 %v1134_v54, %s2840_s16 }
 0x515   : > { %v991_v58 = vpop.permute.xlu1 %990 }
 0x516   : > { %v1001_v60 = vsel %vm554_vm2, %v839_v34, %v991_v58 }
 0x51d   : > { %v999_v61 = vpop.permute.xlu1 %998  ;;  %v995_v62 = vpop.permute.xlu0 %994 }
 0x51e   : > { %v1003_v63 = vsel %vm1002_vm4, %v1001_v60, %v995_v62 }
 0x51f   : > { %v1005_v1 = vsel %vm1004_vm5, %v1003_v63, %v999_v61 }
 0x520   : > { %v1006_v2 = vpack.c.bf16 %v1005_v1, %v1005_v1 }
 0x522   : > { %2055 = vmatmul.mubr.msk.bf16.vlgmr.msra.gmra.mxu1 %vm492_vm1, %v1006_v2 }
 0x523   : > { %2067 = vmatpush3.bf16.xpose.msra.mxu1 %v1171_v3  ;;  %2068 = vmatprep.mubr.msk.bf16.mxu1 %vm2344_vm0, %v2343_v0 }
 0x524   : > { %2078 = vmatprep.subr.bf16.mxu1 %v2343_v0 }
 0x528   : > { %v1151_v4 = vpop.permute.xlu0 %1150  ;;  %v1154_v8 = vpop.permute.xlu1 %1153 }
 0x529   : > { %v2638_v5 = vpack.c.bf16 %v1151_v4, %v1151_v4  ;;  %v2646_v9 = vpack.c.bf16 %v1154_v8, %v1154_v8 }
 0x52b   : > { %v1217_v6 = vsel %vm554_vm2, %v2638_v5, 0  ;;  %v1263_v14 = vsel %vm554_vm2, %v2646_v9, 0 }
 0x52c   : > { %2073 = vmatpush3.bf16.xpose.msra.mxu0 %v1217_v6  ;;  %v1157_v19 = vpop.permute.xlu1 %1156 }
 0x52d   : > { %2084 = vmatprep.subr.bf16.mxu0 %v2343_v0  ;;  %v2657_v20 = vpack.c.bf16 %v1157_v19, %v1157_v19 }
 0x52f   : > { %v1309_v21 = vsel %vm554_vm2, %v2657_v20, 0 }
 0x5e2   : > { %v1067_v10 = vpop.f32.mrf.mxu1 }
 0x5e3   : > { %v1068_v11 = vadd.f32 %v1908_v7, %v1067_v10 }
 0x5e4   : > { %v2056_v12 = vpop.f32.mrf.mxu1 }
 0x5e5   : > { %v1159_v13 = vpack.c.bf16 %v1068_v11, %v1068_v11  ;;  %1146 = vrot.lane.b32.xlu1 %v1068_v11, %s2840_s16  ;;  %1140 = vrot.lane.b32.xlu0 %v1068_v11, %s2839_s24  ;;  %s1938_s16 = sshll.u32 %s2445_s29, 7 }
 0x5e6   : > { %v1070_v15 = vpop.f32.mrf.mxu1  ;;  %s2763_s0 = scalar_lea.hbm %s2818_s13, %s1938_s16 }
 0x5e7   : > { %2069 = vmatmul.mubr.msk.bf16.vlgmr.msra.gmra.mxu1 %vm554_vm2, %v1159_v13 }
 0x5e8   : > { %v2057_v18 = vpop.f32.mrf.mxu1  ;;  %2079 = vmatpush3.bf16.xpose.msra.mxu1 %v1263_v14  ;;  %2080 = vmatprep.mubr.msk.bf16.mxu1 %vm2344_vm0, %v2343_v0 }
 0x5e9   : > { %1143 = vrot.lane.b32.xlu0 %v1068_v11, %s2838_s15  ;;  %2090 = vmatprep.subr.bf16.mxu1 %v2343_v0  ;;  %s2842_s15 = smov 16  }
 0x657   : > { %v1141_v17 = vpop.permute.xlu0 %1140  ;;  %v1147_v24 = vpop.permute.xlu1 %1146 }
 0x658   : > { %v1160_v16 = vpack.c.bf16 %v1141_v17, %v1141_v17  ;;  %v1162_v25 = vpack.c.bf16 %v1147_v24, %v1147_v24 }
 0x65a   : > { %2075 = vmatmul.mubr.msk.bf16.vlgmr.msra.gmra.mxu0 %vm554_vm2, %v1160_v16 }
 0x65b   : > { %2085 = vmatpush3.bf16.xpose.msra.mxu0 %v1309_v21  ;;  %v1144_v22 = vpop.permute.xlu0 %1143  ;;  %2086 = vmatprep.mubr.msk.bf16.mxu0 %vm2344_vm0, %v2343_v0 }
 0x65c   : > { %v1161_v23 = vpack.c.bf16 %v1144_v22, %v1144_v22  ;;  %2096 = vmatprep.subr.bf16.mxu0 %v2343_v0 }
 0x65e   : > { %2081 = vmatmul.mubr.msk.bf16.vlgmr.msra.gmra.mxu1 %vm554_vm2, %v1161_v23 }
 0x65f   : > { %2092 = vmatprep.mubr.msk.bf16.mxu1 %vm2344_vm0, %v2343_v0 }
 0x662   : > { %2087 = vmatmul.mubr.msk.bf16.vlgmr.msra.gmra.mxu0 %vm554_vm2, %v1162_v25 }
 0x663   : > { %2098 = vmatprep.mubr.msk.bf16.mxu0 %vm2344_vm0, %v2343_v0 }
 0x6a7   : > { %v1207_v26 = vpop.f32.mrf.mxu1 }
 0x6a8   : > { %v1351_v27 = vsel %vm554_vm2, %v1207_v26, -inf }
 0x6a9   : > { %1352 = vmax.xlane.f32.xlu0 %v1351_v27  ;;  %v2070_v28 = vpop.f32.mrf.mxu1 }
 0x6ab   : > { %v1210_v29 = vpop.f32.mrf.mxu1 }
 0x6ad   : > { %v2071_v30 = vpop.f32.mrf.mxu1 }
 0x71a   : > { %v1253_v31 = vpop.f32.mrf.mxu0 }
 0x71b   : > { %v1354_v32 = vsel %vm554_vm2, %v1253_v31, -inf }
 0x71c   : > { %1355 = vmax.xlane.f32.xlu1 %v1354_v32  ;;  %v2076_v33 = vpop.f32.mrf.mxu0  ;;  %v2209_v32 = vld [vmem:[%s2814_s9] sm:$0xff]  }
 0x71d   : > { %v2210_v33 = vld [vmem:[%s2816_s11 + $0x38] sm:$0xff]  }
 0x71e   : > { %v1256_v34 = vpop.f32.mrf.mxu0  ;;  %v1299_v35 = vpop.f32.mrf.mxu1 }
 0x71f   : > { %v1357_v36 = vsel %vm554_vm2, %v1299_v35, -inf }
 0x720   : > { %v2077_v37 = vpop.f32.mrf.mxu0  ;;  %1358 = vmax.xlane.f32.xlu0 %v1357_v36  ;;  %v2082_v38 = vpop.f32.mrf.mxu1 }
 0x722   : > { %v1302_v39 = vpop.f32.mrf.mxu1  ;;  %v1345_v40 = vpop.f32.mrf.mxu0 }
 0x723   : > { %v1360_v41 = vsel %vm554_vm2, %v1345_v40, -inf  ;;  %v2212_v39 = vld [vmem:[%s2816_s11 + $0x28] sm:$0xff]  }
 0x724   : > { %v2088_v42 = vpop.f32.mrf.mxu0  ;;  %1361 = vmax.xlane.f32.xlu0 %v1360_v41  ;;  %v2083_v43 = vpop.f32.mrf.mxu1 }
 0x726   : > { %v1348_v44 = vpop.f32.mrf.mxu0 }
 0x727   : > { %v2213_v44 = vld [vmem:[%s2816_s11 + $0x20] sm:$0xff]  }
 0x728   : > { %v2089_v45 = vpop.f32.mrf.mxu0 }
 0x72d   : > { %1400 = vrot.lane.b32.xlu1 %v2627_v59, %s2841_s30 }
 0x732   : > { %v1353_v46 = vpop.xlane.xlu0 %1352 }
 0x733   : > { %v1363_v47 = vsub.f32 %v1207_v26, %v1353_v46 }
 0x735   : > { %v1367_v48 = vmul.f32 1.442695, %v1363_v47 }
 0x737   : > { %2234 = vpow2.f32 %v1367_v48  ;;  %v2214_v48 = vld [vmem:[%s2816_s11 + $0x18] sm:$0xff]  }
 0x744   : > { %v2235_v49 = vpop.eup %2234 }
 0x745   : > { %v1375_v50 = vsel %vm554_vm2, %v2235_v49, 0.0 }
 0x751   : > { %1376 = vadd.xlane.f32.xlu1 %v1375_v50  ;;  %v2215_v50 = vld [vmem:[%s2816_s11 + $0x10] sm:$0xff]  }
 0x7a5   : > { %v1356_v51 = vpop.xlane.xlu1 %1355 }
 0x7a6   : > { %v1364_v52 = vsub.f32 %v1253_v31, %v1356_v51  ;;  %v2208_v31 = vld [vmem:[%s2814_s9 + $0x8] sm:$0xff]  }
 0x7a7   : > { %v2216_v51 = vld [vmem:[%s2816_s11 + $0x8] sm:$0xff]  }
 0x7a8   : > { %v1369_v53 = vmul.f32 1.442695, %v1364_v52 }
 0x7a9   : > { %v1401_v54 = vpop.permute.xlu1 %1400  ;;  %v1359_v55 = vpop.xlane.xlu0 %1358 }
 0x7aa   : > { %2236 = vpow2.f32 %v1369_v53  ;;  %v1406_v56 = vsel %vm801_vm3, %v1401_v54, 0  ;;  %v1365_v57 = vsub.f32 %v1299_v35, %v1359_v55  ;;  %v2211_v35 = vld [vmem:[%s2816_s11 + $0x30] sm:$0xff]  }
 0x7ab   : > { %2091 = vmatpush3.bf16.msra.mxu1 %v1406_v56 }
 0x7ac   : > { %v1371_v58 = vmul.f32 1.442695, %v1365_v57  ;;  %2102 = vmatprep.subr.bf16.mxu1 %v2343_v0 }
 0x7ad   : > { %v1362_v59 = vpop.xlane.xlu0 %1361 }
 0x7ae   : > { %2238 = vpow2.f32 %v1371_v58  ;;  %v1366_v60 = vsub.f32 %v1345_v40, %v1362_v59  ;;  %v2217_v59 = vld [vmem:[%s2816_s11] sm:$0xff]  }
 0x7b0   : > { %v1373_v61 = vmul.f32 1.442695, %v1366_v60 }
 0x7b2   : > { %2240 = vpow2.f32 %v1373_v61 }
 0x7b7   : > { %v2237_v62 = vpop.eup %2236 }
 0x7b8   : > { %v1378_v63 = vsel %vm554_vm2, %v2237_v62, 0.0 }
 0x7b9   : > { %1379 = vadd.xlane.f32.xlu0 %v1378_v63 }
 0x7bb   : > { %v2239_v1 = vpop.eup %2238 }
 0x7bc   : > { %v1381_v2 = vsel %vm554_vm2, %v2239_v1, 0.0 }
 0x7bd   : > { %1382 = vadd.xlane.f32.xlu1 %v1381_v2 }
 0x7bf   : > { %v2241_v3 = vpop.eup %2240 }
 0x7c0   : > { %v1384_v4 = vsel %vm554_vm2, %v2241_v3, 0.0 }
 0x7c1   : > { %1385 = vadd.xlane.f32.xlu0 %v1384_v4 }
 0x7ce   : > { %1498 = vrot.lane.b32.xlu1 %v2646_v9, %s2841_s30 }
 0x7d2   : > { %1547 = vrot.lane.b32.xlu1 %v2657_v20, %s2841_s30 }
 0x7d7   : > { %1449 = vrot.lane.b32.xlu0 %v2638_v5, %s2841_s30  ;;  %s1893_s30 = sshll.u32 %s455_s21, 3 }
 0x7da   : > { %v1377_v6 = vpop.xlane.xlu1 %1376 }
 0x7db   : > { %2242 = vrcp.f32 %v1377_v6 }
 0x7e8   : > { %v2243_v7 = vpop.eup %2242 }
 0x7e9   : > { %v1391_v8 = vmul.f32 %v2243_v7, %v2235_v49 }
 0x7eb   : > { %v1395_v10 = vpack.c.bf16 %v1391_v8, %v1391_v8 }
 0x7ed   : > { %2093 = vmatmul.mubr.msk.bf16.vlgmr.msra.gmra.mxu1 %vm554_vm2, %v1395_v10 }
 0x7ee   : > { %2104 = vmatprep.mubr.msk.bf16.mxu1 %vm2344_vm0, %v2343_v0 }
 0x842   : > { %v1380_v11 = vpop.xlane.xlu0 %1379 }
 0x843   : > { %2244 = vrcp.f32 %v1380_v11 }
 0x846   : > { %v1383_v12 = vpop.xlane.xlu1 %1382 }
 0x847   : > { %2246 = vrcp.f32 %v1383_v12 }
 0x84a   : > { %v1499_v9 = vpop.permute.xlu1 %1498  ;;  %v1386_v13 = vpop.xlane.xlu0 %1385 }
 0x84b   : > { %v1504_v14 = vsel %vm801_vm3, %v1499_v9, 0  ;;  %2248 = vrcp.f32 %v1386_v13 }
 0x84c   : > { %2103 = vmatpush3.bf16.msra.mxu1 %v1504_v14 }
 0x84d   : > { %2114 = vmatprep.subr.bf16.mxu1 %v2343_v0 }
 0x84e   : > { %v1450_v5 = vpop.permute.xlu0 %1449  ;;  %v1548_v20 = vpop.permute.xlu1 %1547 }
 0x84f   : > { %v1455_v15 = vsel %vm801_vm3, %v1450_v5, 0  ;;  %v1553_v21 = vsel %vm801_vm3, %v1548_v20, 0 }
 0x850   : > { %v2245_v18 = vpop.eup %2244  ;;  %2097 = vmatpush3.bf16.msra.mxu0 %v1455_v15 }
 0x851   : > { %2108 = vmatprep.subr.bf16.mxu0 %v2343_v0  ;;  %v1392_v19 = vmul.f32 %v2245_v18, %v2237_v62 }
 0x853   : > { %v1396_v17 = vpack.c.bf16 %v1392_v19, %v1392_v19 }
 0x854   : > { %v2247_v16 = vpop.eup %2246 }
 0x855   : > { %2099 = vmatmul.mubr.msk.bf16.vlgmr.msra.gmra.mxu0 %vm554_vm2, %v1396_v17  ;;  %v1393_v22 = vmul.f32 %v2247_v16, %v2239_v1 }
 0x856   : > { %2109 = vmatpush3.bf16.msra.mxu0 %v1553_v21  ;;  %2110 = vmatprep.mubr.msk.bf16.mxu0 %vm2344_vm0, %v2343_v0 }
 0x857   : > { %v1397_v23 = vpack.c.bf16 %v1393_v22, %v1393_v22  ;;  %2122 = vmatprep.subr.bf16.mxu0 %v2343_v0 }
 0x858   : > { %v2249_v24 = vpop.eup %2248 }
 0x859   : > { %2105 = vmatmul.mubr.msk.bf16.vlgmr.msra.gmra.mxu1 %vm554_vm2, %v1397_v23  ;;  %v1394_v25 = vmul.f32 %v2249_v24, %v2241_v3  ;;  %v1928_v3 = vld [vmem:[%s2817_s12] ss:$0 sm:$0xff] }
 0x85a   : > { %2118 = vmatprep.mubr.msk.bf16.mxu1 %vm2344_vm0, %v2343_v0  ;;  %2115 = vmatpush3.bf16.msra.mxu1 %v2208_v31 }
 0x85b   : > { %v1398_v26 = vpack.c.bf16 %v1394_v25, %v1394_v25  ;;  %2116 = vmatprep.subr.bf16.mxu1 %v2343_v0 }
 0x85d   : > { %2111 = vmatmul.mubr.msk.bf16.vlgmr.msra.gmra.mxu0 %vm554_vm2, %v1398_v26 }
 0x85e   : > { %2138 = vmatprep.mubr.msk.bf16.mxu0 %vm2344_vm0, %v2343_v0  ;;  %2117 = vmatpush3.bf16.msra.mxu1 %v2209_v32 }
 0x85f   : > { %2123 = vmatpush3.bf16.msra.mxu0 %v2210_v33 }
 0x860   : > { %2124 = vmatprep.subr.bf16.mxu0 %v2343_v0 }
 0x863   : > { %2125 = vmatpush3.bf16.msra.mxu0 %v2211_v35 }
 0x864   : > { %2126 = vmatprep.subr.bf16.mxu0 %v2343_v0 }
 0x867   : > { %2127 = vmatpush3.bf16.msra.mxu0 %v2212_v39 }
 0x868   : > { %2128 = vmatprep.subr.bf16.mxu0 %v2343_v0 }
 0x86b   : > { %2129 = vmatpush3.bf16.msra.mxu0 %v2213_v44 }
 0x86c   : > { %2130 = vmatprep.subr.bf16.mxu0 %v2343_v0 }
 0x86f   : > { %2131 = vmatpush3.bf16.msra.mxu0 %v2214_v48 }
 0x870   : > { %2132 = vmatprep.subr.bf16.mxu0 %v2343_v0 }
 0x873   : > { %2133 = vmatpush3.bf16.msra.mxu0 %v2215_v50 }
 0x874   : > { %2134 = vmatprep.subr.bf16.mxu0 %v2343_v0 }
 0x877   : > { %2135 = vmatpush3.bf16.msra.mxu0 %v2216_v51 }
 0x878   : > { %2136 = vmatprep.subr.bf16.mxu0 %v2343_v0  ;;  %v1924_v0 = vld [vmem:[%s2815_s10] ss:$0 sm:$0xff] }
 0x87b   : > { %2137 = vmatpush3.bf16.msra.mxu0 %v2217_v59 }
 0x8ad   : > { %v1442_v27 = vpop.f32.mrf.mxu1 }
 0x8af   : > { %v2094_v28 = vpop.f32.mrf.mxu1 }
 0x8b1   : > { %v1445_v29 = vpop.f32.mrf.mxu1 }
 0x8b3   : > { %v2095_v30 = vpop.f32.mrf.mxu1 }
 0x915   : > { %v1491_v34 = vpop.f32.mrf.mxu0 }
 0x916   : > { %1596 = vrot.lane.b32.xlu0 %v1491_v34, %s2350_s22  ;;  %s2843_s22 = smov 24  }
 0x917   : > { %v2100_v36 = vpop.f32.mrf.mxu0 }
 0x919   : > { %v1494_v37 = vpop.f32.mrf.mxu0  ;;  %v1540_v38 = vpop.f32.mrf.mxu1 }
 0x91a   : > { %1600 = vrot.lane.b32.xlu1 %v1540_v38, %s2842_s15  ;;  %s1791_s15 = scalar_lea.sflag [#allocation4], %s455_s21 }
 0x91b   : > { %v2101_v40 = vpop.f32.mrf.mxu0  ;;  %v2106_v41 = vpop.f32.mrf.mxu1 }
 0x91d   : > { %v1543_v42 = vpop.f32.mrf.mxu1  ;;  %v1589_v43 = vpop.f32.mrf.mxu0 }
 0x91e   : > { %1604 = vrot.lane.b32.xlu0 %v1589_v43, %s2843_s22  ;;  %s457_s22 = scalar_lea.vmem [#allocation5], %s1893_s30  ;;  %s2353_s30 = smov [#allocation5]  }
 0x91f   : > { %v2107_v45 = vpop.f32.mrf.mxu1  ;;  %v2112_v46 = vpop.f32.mrf.mxu0  ;;  %s1804_s23 = sshll.u32 %s457_s22, 4  ;;  %s2280_s24 = sshll.u32 %s2353_s30, 4  ;;  %s2765_s23 = int_to_ptr.vmem [resolvable:$true] %s1804_s23  ;;  %s2281_s24 = int_to_ptr.vmem [resolvable:$false] %s2280_s24 }
 0x920   : > { %s2276_s29 = scalar_lea.vmem %s2765_s23, 128  ;;  %s2282_s16 = scalar_lea.vmem %s2281_s24, 256 }
 0x921   : > { %v1592_v47 = vpop.f32.mrf.mxu0  ;;  %p2277_p6 = scmp.ne.s32.totalorder %s2765_s23, %s2276_s29  ;;  %p2283_p11 = scmp.lt.s32.totalorder %s2765_s23, %s2281_s24 }
 0x922   : > { %p2284_p12 = scmp.lt.s32.totalorder %s2282_s16, %s2276_s29 }
 0x923   : > { %v2113_v49 = vpop.f32.mrf.mxu0  ;;  %p2278_p9 = pnand %p2277_p6, %p2462_p5 }
 0x924   : > { %p2285_p13 = por %p2284_p12, %p2283_p11 }
 0x925   : > { %p2279_p10 = pneg %p2278_p9 }
 0x927   : > { %p2286_p0 = pnand %p2285_p13, %p2279_p10 }
 0x988   : > { %v1597_v52 = vpop.permute.xlu0 %1596 }
 0x989   : > { %v1607_v54 = vsel %vm554_vm2, %v1442_v27, %v1597_v52 }
 0x98c   : > { %v1601_v53 = vpop.permute.xlu1 %1600 }
 0x98d   : > { %v1608_v55 = vsel %vm1002_vm4, %v1607_v54, %v1601_v53 }
 0x990   : > { %v1605_v56 = vpop.permute.xlu0 %1604 }
 0x991   : > { %v1609_v57 = vsel %vm1004_vm5, %v1608_v55, %v1605_v56 }
 0x992   : > { %v1610_v58 = vpack.c.bf16 %v1609_v57, %v1609_v57 }
 0x994   : > { %2119 = vmatmul.mubr.msk.bf16.vlgmr.msra.gmra.mxu1 %vm492_vm1, %v1610_v58 }
 0xa54   : > { %v1671_v60 = vpop.f32.mrf.mxu1 }
 0xa55   : > { %v1672_v61 = vadd.f32 %v1924_v0, %v1671_v60 }
 0xa56   : > { %v2120_v62 = vpop.f32.mrf.mxu1 }
 0xa57   : > { %v1677_v63 = vpack.c.bf16 %v1672_v61, %v1672_v61 }
 0xa58   : > { %v1674_v1 = vpop.f32.mrf.mxu1 }
 0xa59   : > { %2139 = vmatmul.mubr.bf16.vlgmr.msra.gmra.mxu0 %v1677_v63 }
 0xa5a   : > { %v2121_v2 = vpop.f32.mrf.mxu1 }
 0xb19   : > { %v1783_v4 = vpop.f32.mrf.mxu0 }
 0xb1a   : > { %v1784_v6 = vadd.f32 %v1928_v3, %v1783_v4 }
 0xb1b   : > { %v2140_v7 = vpop.f32.mrf.mxu0 }
 0xb1c   : > { %1789 = vst.msk [vmem:[%s457_s22] sm:$0xff] %vm492_vm1, %v1784_v6 }
 0xb1d   : > { %v1786_v8 = vpop.f32.mrf.mxu0 }
 0xb1e   : > { %2289 = shalt.err (!%p2286_p0)
}
 0xb1f   : > { %s2290_s22 = scalar_lea.hbm %s2763_s0, 128  ;;  %s2294_s2 = scalar_lea.hbm %s2818_s13, 256 }
 0xb20   : > { %p2291_p1 = scmp.ne.s32.totalorder %s2763_s0, %s2290_s22  ;;  %p2295_p4 = scmp.lt.s32.totalorder %s2763_s0, %s2818_s13 }
 0xb21   : > { %p2296_p7 = scmp.lt.s32.totalorder %s2294_s2, %s2290_s22 }
 0xb22   : > { %p2292_p2 = pnand %p2291_p1, %p2462_p5 }
 0xb23   : > { %p2297_p8 = por %p2296_p7, %p2295_p4 }
 0xb24   : > { %p2293_p3 = pneg %p2292_p2 }
 0xb26   : > { %p2298_p6 = pnand %p2297_p8, %p2293_p3 }
 0xb28   : > { %2301 = shalt.err (!%p2298_p6)
}
 0xb29   : > { %2146 = dma.vmem_to_hbm [thread:$0]  (%p2462_p5), %s2765_s23, 128, %s2763_s0, %s1791_s15   ;;  %v2141_v10 = vpop.f32.mrf.mxu0 }
 0xb2a PF: > { %p2158_p9 = scmp.ge.s32.totalorder %s2340_s28, 2  ;;  %s1816_s29 = sand.u32 1, %s2328_s25  }
 0xb2b   : > { %p2844_p10 = scmp.ne.s32.totalorder %s2833_s19, 0  ;;  %s1817_s1 = scalar_lea.sflag [#allocation4], %s1816_s29 }
 0xb2d   : > { %p2153_p11 = pnand %p2158_p9, %p2844_p10 }
 0xb2f   : > { %p2154_p12 = pneg %p2153_p11 }
 0xb31   : > { %2323 = dma.done.wait (%p2154_p12), %s1817_s1, 128  }
 0xb32   : > { %2325 = vsyncadd (%p2154_p12), %s1817_s1, 4294967168  ;;  %p24_p13 = scmp.ge.s32.totalorder %s2449_s14, 4   ;;  %s2845_s25 = smov %s2332_s26 }
 0xb33   : > { %s2846_s26 = smov %s2336_s27  ;;  %s2847_s27 = smov %s2460_s17 }
 0xb34   : > { %s2848_s28 = smov %s2449_s14  ;;  %26 = sbr.rel (!%p24_p13) target bundleno = 8 (0x8), region = 115 }
 0xb39   :  { %1822 = vsyncpa [#allocation3], 1 }
 0xb3a   :  { %1824 = vsyncpa [#allocation3 + $0x1], 1 }
 0xb3b   :  { %1825 = vsyncpa [#allocation4], 1 }
 0xb3c   :  { %1827 = vsyncpa [#allocation4 + $0x1], 1 }

</bundles_post_ra>
